<compile_context>
chip_gen: v7x
topology: tpu7x:2x2x1
jax: 0.10.0
libtpu: 0.0.40
codegen_flags: <defaults>
</compile_context>

<pallas_src>
import functools

import jax
import jax.numpy as jnp
from jax.experimental import pallas as pl
from jax.experimental.pallas import tpu as pltpu


def _round_up(x, m):
    return ((x + m - 1) // m) * m


def _tpu_budget():
    """Generation-aware VMEM limit (bytes) and MXU M dimension."""
    vmem_capacity = 64 * 1024 * 1024          # conservative default (v7x-sized VMEM)
    try:
        vmem_capacity = int(pltpu.get_tpu_info().vmem_capacity_bytes)
    except Exception:
        pass
    vmem_limit = (vmem_capacity * 3) // 4      # ~96 MiB on v5e/v6e, ~48 MiB on v7x
    mxu_m = 256                                # v6e/v7x MXU is 2x256^2
    try:
        kind = jax.devices()[0].device_kind.lower()
        if any(v in kind for v in ("v2", "v3", "v4", "v5")):
            mxu_m = 128                        # 128-wide MXUs on older generations
    except Exception:
        pass
    return vmem_limit, mxu_m


@functools.lru_cache(maxsize=8)
def _dft_kron_matrices(h, w):
    """bf16 real/imag parts of the (H*W, H*W) Kronecker DFT matrix
       K[(y,x),(v,u)] = exp(-2*pi*i*(y*v/H + x*u/W)) = (F_H (x) F_W)[(y,x),(v,u)].
    Phases use integer products mod n (in f32) before cos/sin for accuracy; cached
    per (H, W) so they are built and uploaded once, not every training step."""
    kh = jnp.arange(h, dtype=jnp.int32)
    kw = jnp.arange(w, dtype=jnp.int32)
    ph_h = (jnp.outer(kh, kh) % h).astype(jnp.float32) * (2.0 * jnp.pi / h)   # (H, H)
    ph_w = (jnp.outer(kw, kw) % w).astype(jnp.float32) * (2.0 * jnp.pi / w)   # (W, W)
    ang = (ph_h[:, None, :, None] + ph_w[None, :, None, :]).reshape(h * w, h * w)
    kr = jnp.cos(ang).astype(jnp.bfloat16)
    ki = (-jnp.sin(ang)).astype(jnp.bfloat16)     # exp(-i*ang) = cos - i*sin
    return kr, ki


def _pick_block_rows(nc, hw, vmem_limit, mxu_m):
    """Images per grid step.  Aligned to the MXU M dimension when nc allows,
    otherwise a multiple of 8; capped by a generation-aware VMEM budget."""
    kron_bytes = 2 * 2 * hw * hw * 2           # both matrices, bf16, assume 2 buffers
    budget = vmem_limit - kron_bytes - (4 << 20)
    per_row = 40 * hw                          # 2xf32 inputs x2 bufs + bf16 d + f32 yr/yi/l
    row_cap = max(8, budget // per_row) if budget > 0 else 8
    if nc >= mxu_m and row_cap >= mxu_m:
        b = min(row_cap, _round_up(nc, mxu_m)) // mxu_m * mxu_m
        # Keep at least 2 steps so the v7x core-split has work for both TensorCores.
        while b > mxu_m and -(-nc // b) < 2:
            b -= mxu_m
        return b
    return max(8, min((row_cap // 8) * 8, _round_up(nc, 8)))


def _make_kernel(b, hw, nc, sps, needs_mask):
    def kernel(inp_ref, tgt_ref, kr_ref, ki_ref,
               sum_ref, min_ref, max_ref,
               acc_sum, acc_min, acc_max):
        c = pl.program_id(0)          # core-split ("parallel") axis
        i = pl.program_id(1)          # reduction ("arbitrary") axis

        @pl.when(i == 0)
        def _():
            acc_sum[c] = jnp.zeros((8, hw), jnp.float32)
            acc_min[c] = jnp.full((8, hw), jnp.inf, jnp.float32)
            acc_max[c] = jnp.full((8, hw), -jnp.inf, jnp.float32)

        # Exact f32 subtraction on the VPU; bf16 operands for the MXU; f32 accumulation.
        d = (tgt_ref[...] - inp_ref[...]).astype(jnp.bfloat16)              # (b, hw)
        yr = jnp.dot(d, kr_ref[...], preferred_element_type=jnp.float32)
        yi = jnp.dot(d, ki_ref[...], preferred_element_type=jnp.float32)
        l = jnp.log(jnp.sqrt(yr * yr + yi * yi) + 1.0)                      # (b, hw) f32

        if needs_mask:
            row = jax.lax.broadcasted_iota(jnp.int32, (b, 1), 0)
            valid = (c * sps + i) * b + row < nc
            l_sum = jnp.where(valid, l, 0.0)
            l_min = jnp.where(valid, l, jnp.inf)
            l_max = jnp.where(valid, l, -jnp.inf)
        else:
            l_sum = l_min = l_max = l

        # Fold (b, hw) statistics into small (8, hw) accumulators: pure VPU lane ops.
        g = b // 8
        acc_sum[c] = acc_sum[c] + jnp.sum(l_sum.reshape(g, 8, hw), axis=0)
        acc_min[c] = jnp.minimum(acc_min[c], jnp.min(l_min.reshape(g, 8, hw), axis=0))
        acc_max[c] = jnp.maximum(acc_max[c], jnp.max(l_max.reshape(g, 8, hw), axis=0))

        @pl.when(i == sps - 1)
        def _():
            # One cross-lane (XLU) reduction per statistic per core slice; splat the
            # scalar into a full (8,128) tile so the output store is tile-aligned.
            sum_ref[...] = jnp.full((1, 8, 128), jnp.sum(acc_sum[c]), jnp.float32)
            min_ref[...] = jnp.full((1, 8, 128), jnp.min(acc_min[c]), jnp.float32)
            max_ref[...] = jnp.full((1, 8, 128), jnp.max(acc_max[c]), jnp.float32)
    return kernel


def freq_recon_loss(inp, tgt):
    """inp, tgt: float arrays of shape (N, C, H, W). Returns scalar float32 loss."""
    n, c, h, w = inp.shape
    nc, hw = n * c, h * w

    inp2 = inp.astype(jnp.float32).reshape(nc, hw)   # contiguous reshape: free view
    tgt2 = tgt.astype(jnp.float32).reshape(nc, hw)
    kr, ki = _dft_kron_matrices(h, w)

    vmem_limit, mxu_m = _tpu_budget()
    # TODO(synk): for H*W >~ 1024-2048 the (HW, HW) Kron DFT matrices outgrow VMEM
    # (especially v7x's 64 MiB); that regime needs a separable two-stage (H,H)/(W,W)
    # DFT kernel instead of the Kron path.
    b = _pick_block_rows(nc, hw, vmem_limit, mxu_m)

    steps = -(-nc // b)
    n_split = 2 if steps >= 2 else 1          # feed both TensorCores on v7x
    sps = -(-steps // n_split)                # steps per core slice
    padded_nc = n_split * sps * b
    needs_mask = padded_nc != nc
    if needs_mask:
        pad = padded_nc - nc
        inp2 = jnp.pad(inp2, ((0, pad), (0, 0)))
        tgt2 = jnp.pad(tgt2, ((0, pad), (0, 0)))

    out_sds = jax.ShapeDtypeStruct((n_split, 8, 128), jnp.float32)
    out_spec = pl.BlockSpec((1, 8, 128), lambda ci, ii: (ci, 0, 0))

    def run(single_buffer_kron):
        if single_buffer_kron:
            kron_spec = pl.BlockSpec((hw, hw), lambda ci, ii: (0, 0),
                                     pipeline_mode=pl.Buffered(1))
        else:
            kron_spec = pl.BlockSpec((hw, hw), lambda ci, ii: (0, 0))
        return pl.pallas_call(
            _make_kernel(b, hw, nc, sps, needs_mask),
            out_shape=(out_sds, out_sds, out_sds),
            grid_spec=pltpu.PrefetchScalarGridSpec(
                num_scalar_prefetch=0,
                grid=(n_split, sps),
                in_specs=[
                    pl.BlockSpec((b, hw), lambda ci, ii: (ci * sps + ii, 0)),  # input
                    pl.BlockSpec((b, hw), lambda ci, ii: (ci * sps + ii, 0)),  # target
                    kron_spec,                                                 # Kron real
                    kron_spec,                                                 # Kron imag
                ],
                out_specs=(out_spec, out_spec, out_spec),
                scratch_shapes=[pltpu.VMEM((n_split, 8, hw), jnp.float32)] * 3,
            ),
            compiler_params=pltpu.CompilerParams(
                dimension_semantics=("parallel", "arbitrary"),
                vmem_limit_bytes=int(vmem_limit)),
        )(inp2, tgt2, kr, ki)

    try:
        sums, mins, maxs = run(True)     # grid-invariant Kron tiles: single-buffered
    except Exception:                    # fallback if Buffered(1) is unsupported
        sums, mins, maxs = run(False)

    mean_l = jnp.sum(sums[:, 0, 0]) / jnp.float32(nc * hw)
    mn = jnp.min(mins[:, 0, 0])
    mx = jnp.max(maxs[:, 0, 0])
    # mean((L - min)/(max - min + 1e-5)) == (mean(L) - min)/(max - min + 1e-5)
    return (mean_l - mn) / (mx - mn + jnp.float32(1e-5))


def _reference_loss(inp, tgt):
    # Pure-JAX reference mirroring the PyTorch module (fftshift included).
    f_i = jnp.fft.fftshift(jnp.fft.fftn(inp, axes=(2, 3)), axes=(2, 3))
    f_t = jnp.fft.fftshift(jnp.fft.fftn(tgt, axes=(2, 3)), axes=(2, 3))
    l = jnp.log(jnp.abs(f_t - f_i) + 1.0)
    mn, mx = l.min(), l.max()
    return jnp.mean((l - mn) / (mx - mn + 1e-5))


if __name__ == "__main__":
    key = jax.random.PRNGKey(0)
    k1, k2 = jax.random.split(key)
    N, C, H, W = 2, 4, 16, 16
    x = jax.random.normal(k1, (N, C, H, W), dtype=jnp.float32)
    y = jax.random.normal(k2, (N, C, H, W), dtype=jnp.float32)

    loss = jax.block_until_ready(freq_recon_loss(x, y))
    ref = jax.block_until_ready(_reference_loss(x, y))
    assert jnp.abs(loss - ref) < 1e-2, (loss, ref)

    print("KERNEL_OK")
</pallas_src>

<mosaic_0001>
module attributes {stable_mosaic.version = 11 : i64} {
  func.func @kernel(%arg0: i32, %arg1: i32, %arg2: memref<8x256xf32, #tpu.memory_space<vmem>>, %arg3: memref<8x256xf32, #tpu.memory_space<vmem>>, %arg4: memref<256x256xbf16, #tpu.memory_space<vmem>>, %arg5: memref<256x256xbf16, #tpu.memory_space<vmem>>, %arg6: memref<1x8x128xf32, #tpu.memory_space<vmem>>, %arg7: memref<1x8x128xf32, #tpu.memory_space<vmem>>, %arg8: memref<1x8x128xf32, #tpu.memory_space<vmem>>, %arg9: memref<1x8x256xf32, #tpu.memory_space<vmem>>, %arg10: memref<1x8x256xf32, #tpu.memory_space<vmem>>, %arg11: memref<1x8x256xf32, #tpu.memory_space<vmem>>) attributes {dimension_semantics = [#tpu.dimension_semantics<parallel>, #tpu.dimension_semantics<arbitrary>], iteration_bounds = array<i64: 1, 1>, scalar_prefetch = 0 : i64, scratch_operands = 3 : i64, tpu.core_type = #tpu.core_type<tc>, window_params = [{transform_indices = @transform_0, window_bounds = array<i64: 8, 256>}, {transform_indices = @transform_1, window_bounds = array<i64: 8, 256>}, {pipeline_mode = #tpu.pipeline_mode<synchronous>, transform_indices = @transform_2, window_bounds = array<i64: 256, 256>}, {pipeline_mode = #tpu.pipeline_mode<synchronous>, transform_indices = @transform_3, window_bounds = array<i64: 256, 256>}, {transform_indices = @transform_4, window_bounds = array<i64: 1, 8, 128>}, {transform_indices = @transform_5, window_bounds = array<i64: 1, 8, 128>}, {transform_indices = @transform_6, window_bounds = array<i64: 1, 8, 128>}]} {
    %c0_i32 = arith.constant 0 : i32
    %0 = arith.cmpi eq, %arg1, %c0_i32 : i32
    %1 = arith.extui %0 : i1 to i32
    %c0_i32_0 = arith.constant 0 : i32
    %2 = arith.cmpi ne, %1, %c0_i32_0 : i32
    scf.if %2 {
      %cst_27 = arith.constant 0.000000e+00 : f32
      %51 = vector.broadcast %cst_27 : f32 to vector<8x256xf32>
      %52 = arith.index_cast %arg0 : i32 to index
      %c0_28 = arith.constant 0 : index
      %c0_29 = arith.constant 0 : index
      %53 = vector.load %arg9[%52, %c0_28, %c0_29] : memref<1x8x256xf32, #tpu.memory_space<vmem>>, vector<1x8x256xf32>
      %54 = vector.shape_cast %53 : vector<1x8x256xf32> to vector<8x256xf32>
      %55 = vector.shape_cast %51 : vector<8x256xf32> to vector<1x8x256xf32>
      tpu.vector_store %arg9[%52, %c0_28, %c0_29], %55 {strides = array<i32>} : memref<1x8x256xf32, #tpu.memory_space<vmem>>, vector<1x8x256xf32>,
      %cst_30 = arith.constant 0x7F800000 : f32
      %56 = vector.broadcast %cst_30 : f32 to vector<8x256xf32>
      %57 = arith.index_cast %arg0 : i32 to index
      %c0_31 = arith.constant 0 : index
      %c0_32 = arith.constant 0 : index
      %58 = vector.load %arg10[%57, %c0_31, %c0_32] : memref<1x8x256xf32, #tpu.memory_space<vmem>>, vector<1x8x256xf32>
      %59 = vector.shape_cast %58 : vector<1x8x256xf32> to vector<8x256xf32>
      %60 = vector.shape_cast %56 : vector<8x256xf32> to vector<1x8x256xf32>
      tpu.vector_store %arg10[%57, %c0_31, %c0_32], %60 {strides = array<i32>} : memref<1x8x256xf32, #tpu.memory_space<vmem>>, vector<1x8x256xf32>,
      %cst_33 = arith.constant 0xFF800000 : f32
      %61 = vector.broadcast %cst_33 : f32 to vector<8x256xf32>
      %62 = arith.index_cast %arg0 : i32 to index
      %c0_34 = arith.constant 0 : index
      %c0_35 = arith.constant 0 : index
      %63 = vector.load %arg11[%62, %c0_34, %c0_35] : memref<1x8x256xf32, #tpu.memory_space<vmem>>, vector<1x8x256xf32>
      %64 = vector.shape_cast %63 : vector<1x8x256xf32> to vector<8x256xf32>
      %65 = vector.shape_cast %61 : vector<8x256xf32> to vector<1x8x256xf32>
      tpu.vector_store %arg11[%62, %c0_34, %c0_35], %65 {strides = array<i32>} : memref<1x8x256xf32, #tpu.memory_space<vmem>>, vector<1x8x256xf32>,
    } else {
    }
    %c0 = arith.constant 0 : index
    %c0_1 = arith.constant 0 : index
    %3 = vector.load %arg3[%c0, %c0_1] : memref<8x256xf32, #tpu.memory_space<vmem>>, vector<8x256xf32>
    %c0_2 = arith.constant 0 : index
    %c0_3 = arith.constant 0 : index
    %4 = vector.load %arg2[%c0_2, %c0_3] : memref<8x256xf32, #tpu.memory_space<vmem>>, vector<8x256xf32>
    %5 = arith.subf %3, %4 : vector<8x256xf32>
    %6 = arith.truncf %5 : vector<8x256xf32> to vector<8x256xbf16>
    %c0_4 = arith.constant 0 : index
    %c0_5 = arith.constant 0 : index
    %7 = vector.load %arg4[%c0_4, %c0_5] : memref<256x256xbf16, #tpu.memory_space<vmem>>, vector<256x256xbf16>
    %cst = arith.constant dense<0.000000e+00> : vector<8x256xf32>
    %8 = tpu.matmul %6, %7, %cst {dimension_numbers = #tpu.dot_dimension_numbers<[1], [0], [0], [1], [0, 0, 1, 1], [], []>} : vector<8x256xbf16>, vector<256x256xbf16>, vector<8x256xf32> -> vector<8x256xf32>
    %c0_6 = arith.constant 0 : index
    %c0_7 = arith.constant 0 : index
    %9 = vector.load %arg5[%c0_6, %c0_7] : memref<256x256xbf16, #tpu.memory_space<vmem>>, vector<256x256xbf16>
    %cst_8 = arith.constant dense<0.000000e+00> : vector<8x256xf32>
    %10 = tpu.matmul %6, %9, %cst_8 {dimension_numbers = #tpu.dot_dimension_numbers<[1], [0], [0], [1], [0, 0, 1, 1], [], []>} : vector<8x256xbf16>, vector<256x256xbf16>, vector<8x256xf32> -> vector<8x256xf32>
    %11 = arith.mulf %8, %8 : vector<8x256xf32>
    %12 = arith.mulf %10, %10 : vector<8x256xf32>
    %13 = arith.addf %11, %12 : vector<8x256xf32>
    %14 = math.sqrt %13 : vector<8x256xf32>
    %cst_9 = arith.constant 1.000000e+00 : f32
    %15 = vector.broadcast %cst_9 : f32 to vector<8x256xf32>
    %16 = arith.addf %14, %15 : vector<8x256xf32>
    %17 = math.log %16 : vector<8x256xf32>
    %18 = arith.index_cast %arg0 : i32 to index
    %c0_10 = arith.constant 0 : index
    %c0_11 = arith.constant 0 : index
    %19 = vector.load %arg9[%18, %c0_10, %c0_11] : memref<1x8x256xf32, #tpu.memory_space<vmem>>, vector<1x8x256xf32>
    %20 = vector.shape_cast %19 : vector<1x8x256xf32> to vector<8x256xf32>
    %21 = vector.shape_cast %17 : vector<8x256xf32> to vector<1x8x256xf32>
    %cst_12 = arith.constant dense<0.000000e+00> : vector<8x256xf32>
    %22 = vector.multi_reduction <add>, %21, %cst_12 [0] : vector<1x8x256xf32> to vector<8x256xf32>
    %23 = arith.addf %20, %22 : vector<8x256xf32>
    %24 = arith.index_cast %arg0 : i32 to index
    %c0_13 = arith.constant 0 : index
    %c0_14 = arith.constant 0 : index
    %25 = vector.load %arg9[%24, %c0_13, %c0_14] : memref<1x8x256xf32, #tpu.memory_space<vmem>>, vector<1x8x256xf32>
    %26 = vector.shape_cast %25 : vector<1x8x256xf32> to vector<8x256xf32>
    %27 = vector.shape_cast %23 : vector<8x256xf32> to vector<1x8x256xf32>
    tpu.vector_store %arg9[%24, %c0_13, %c0_14], %27 {strides = array<i32>} : memref<1x8x256xf32, #tpu.memory_space<vmem>>, vector<1x8x256xf32>,
    %28 = arith.index_cast %arg0 : i32 to index
    %c0_15 = arith.constant 0 : index
    %c0_16 = arith.constant 0 : index
    %29 = vector.load %arg10[%28, %c0_15, %c0_16] : memref<1x8x256xf32, #tpu.memory_space<vmem>>, vector<1x8x256xf32>
    %30 = vector.shape_cast %29 : vector<1x8x256xf32> to vector<8x256xf32>
    %31 = vector.shape_cast %17 : vector<8x256xf32> to vector<1x8x256xf32>
    %cst_17 = arith.constant dense<0x7F800000> : vector<8x256xf32>
    %32 = vector.multi_reduction <minimumf>, %31, %cst_17 [0] : vector<1x8x256xf32> to vector<8x256xf32>
    %33 = arith.minimumf %30, %32 : vector<8x256xf32>
    %34 = arith.index_cast %arg0 : i32 to index
    %c0_18 = arith.constant 0 : index
    %c0_19 = arith.constant 0 : index
    %35 = vector.load %arg10[%34, %c0_18, %c0_19] : memref<1x8x256xf32, #tpu.memory_space<vmem>>, vector<1x8x256xf32>
    %36 = vector.shape_cast %35 : vector<1x8x256xf32> to vector<8x256xf32>
    %37 = vector.shape_cast %33 : vector<8x256xf32> to vector<1x8x256xf32>
    tpu.vector_store %arg10[%34, %c0_18, %c0_19], %37 {strides = array<i32>} : memref<1x8x256xf32, #tpu.memory_space<vmem>>, vector<1x8x256xf32>,
    %38 = arith.index_cast %arg0 : i32 to index
    %c0_20 = arith.constant 0 : index
    %c0_21 = arith.constant 0 : index
    %39 = vector.load %arg11[%38, %c0_20, %c0_21] : memref<1x8x256xf32, #tpu.memory_space<vmem>>, vector<1x8x256xf32>
    %40 = vector.shape_cast %39 : vector<1x8x256xf32> to vector<8x256xf32>
    %41 = vector.shape_cast %17 : vector<8x256xf32> to vector<1x8x256xf32>
    %cst_22 = arith.constant dense<0xFF800000> : vector<8x256xf32>
    %42 = vector.multi_reduction <maximumf>, %41, %cst_22 [0] : vector<1x8x256xf32> to vector<8x256xf32>
    %43 = arith.maximumf %40, %42 : vector<8x256xf32>
    %44 = arith.index_cast %arg0 : i32 to index
    %c0_23 = arith.constant 0 : index
    %c0_24 = arith.constant 0 : index
    %45 = vector.load %arg11[%44, %c0_23, %c0_24] : memref<1x8x256xf32, #tpu.memory_space<vmem>>, vector<1x8x256xf32>
    %46 = vector.shape_cast %45 : vector<1x8x256xf32> to vector<8x256xf32>
    %47 = vector.shape_cast %43 : vector<8x256xf32> to vector<1x8x256xf32>
    tpu.vector_store %arg11[%44, %c0_23, %c0_24], %47 {strides = array<i32>} : memref<1x8x256xf32, #tpu.memory_space<vmem>>, vector<1x8x256xf32>,
    %c0_i32_25 = arith.constant 0 : i32
    %48 = arith.cmpi eq, %arg1, %c0_i32_25 : i32
    %49 = arith.extui %48 : i1 to i32
    %c0_i32_26 = arith.constant 0 : i32
    %50 = arith.cmpi ne, %49, %c0_i32_26 : i32
    scf.if %50 {
      %51 = arith.index_cast %arg0 : i32 to index
      %c0_27 = arith.constant 0 : index
      %c0_28 = arith.constant 0 : index
      %52 = vector.load %arg9[%51, %c0_27, %c0_28] : memref<1x8x256xf32, #tpu.memory_space<vmem>>, vector<1x8x256xf32>
      %53 = vector.shape_cast %52 : vector<1x8x256xf32> to vector<8x256xf32>
      %54 = vector.shape_cast %53 : vector<8x256xf32> to vector<1x8x256xf32>
      %cst_29 = arith.constant dense<0.000000e+00> : vector<1xf32>
      %55 = vector.multi_reduction <add>, %54, %cst_29 [1, 2] : vector<1x8x256xf32> to vector<1xf32>
      %56 = vector.shape_cast %55 : vector<1xf32> to vector<1x1x1xf32>
      %57 = vector.extract %56[0, 0, 0] : f32 from vector<1x1x1xf32>
      %58 = vector.broadcast %57 : f32 to vector<1x8x128xf32>
      %c0_30 = arith.constant 0 : index
      %c0_31 = arith.constant 0 : index
      %c0_32 = arith.constant 0 : index
      %59 = vector.load %arg6[%c0_30, %c0_31, %c0_32] : memref<1x8x128xf32, #tpu.memory_space<vmem>>, vector<1x8x128xf32>
      tpu.vector_store %arg6[%c0_30, %c0_31, %c0_32], %58 {strides = array<i32>} : memref<1x8x128xf32, #tpu.memory_space<vmem>>, vector<1x8x128xf32>,
      %60 = arith.index_cast %arg0 : i32 to index
      %c0_33 = arith.constant 0 : index
      %c0_34 = arith.constant 0 : index
      %61 = vector.load %arg10[%60, %c0_33, %c0_34] : memref<1x8x256xf32, #tpu.memory_space<vmem>>, vector<1x8x256xf32>
      %62 = vector.shape_cast %61 : vector<1x8x256xf32> to vector<8x256xf32>
      %63 = vector.shape_cast %62 : vector<8x256xf32> to vector<1x8x256xf32>
      %cst_35 = arith.constant dense<0x7F800000> : vector<1xf32>
      %64 = vector.multi_reduction <minimumf>, %63, %cst_35 [1, 2] : vector<1x8x256xf32> to vector<1xf32>
      %65 = vector.shape_cast %64 : vector<1xf32> to vector<1x1x1xf32>
      %66 = vector.extract %65[0, 0, 0] : f32 from vector<1x1x1xf32>
      %67 = vector.broadcast %66 : f32 to vector<1x8x128xf32>
      %c0_36 = arith.constant 0 : index
      %c0_37 = arith.constant 0 : index
      %c0_38 = arith.constant 0 : index
      %68 = vector.load %arg7[%c0_36, %c0_37, %c0_38] : memref<1x8x128xf32, #tpu.memory_space<vmem>>, vector<1x8x128xf32>
      tpu.vector_store %arg7[%c0_36, %c0_37, %c0_38], %67 {strides = array<i32>} : memref<1x8x128xf32, #tpu.memory_space<vmem>>, vector<1x8x128xf32>,
      %69 = arith.index_cast %arg0 : i32 to index
      %c0_39 = arith.constant 0 : index
      %c0_40 = arith.constant 0 : index
      %70 = vector.load %arg11[%69, %c0_39, %c0_40] : memref<1x8x256xf32, #tpu.memory_space<vmem>>, vector<1x8x256xf32>
      %71 = vector.shape_cast %70 : vector<1x8x256xf32> to vector<8x256xf32>
      %72 = vector.shape_cast %71 : vector<8x256xf32> to vector<1x8x256xf32>
      %cst_41 = arith.constant dense<0xFF800000> : vector<1xf32>
      %73 = vector.multi_reduction <maximumf>, %72, %cst_41 [1, 2] : vector<1x8x256xf32> to vector<1xf32>
      %74 = vector.shape_cast %73 : vector<1xf32> to vector<1x1x1xf32>
      %75 = vector.extract %74[0, 0, 0] : f32 from vector<1x1x1xf32>
      %76 = vector.broadcast %75 : f32 to vector<1x8x128xf32>
      %c0_42 = arith.constant 0 : index
      %c0_43 = arith.constant 0 : index
      %c0_44 = arith.constant 0 : index
      %77 = vector.load %arg8[%c0_42, %c0_43, %c0_44] : memref<1x8x128xf32, #tpu.memory_space<vmem>>, vector<1x8x128xf32>
      tpu.vector_store %arg8[%c0_42, %c0_43, %c0_44], %76 {strides = array<i32>} : memref<1x8x128xf32, #tpu.memory_space<vmem>>, vector<1x8x128xf32>,
    } else {
    }
    return
  }
  func.func @transform_0(%arg0: i32, %arg1: i32) -> (i32, i32) {
    %c1_i32 = arith.constant 1 : i32
    %0 = arith.muli %arg0, %c1_i32 : i32
    %1 = arith.addi %0, %arg1 : i32
    %c0_i32 = arith.constant 0 : i32
    %c0_i32_0 = arith.constant 0 : i32
    return %1, %c0_i32 : i32, i32
  }
  func.func @transform_1(%arg0: i32, %arg1: i32) -> (i32, i32) {
    %c1_i32 = arith.constant 1 : i32
    %0 = arith.muli %arg0, %c1_i32 : i32
    %1 = arith.addi %0, %arg1 : i32
    %c0_i32 = arith.constant 0 : i32
    %c0_i32_0 = arith.constant 0 : i32
    return %1, %c0_i32 : i32, i32
  }
  func.func @transform_2(%arg0: i32, %arg1: i32) -> (i32, i32) {
    %c0_i32 = arith.constant 0 : i32
    %c0_i32_0 = arith.constant 0 : i32
    %c0_i32_1 = arith.constant 0 : i32
    return %c0_i32, %c0_i32_0 : i32, i32
  }
  func.func @transform_3(%arg0: i32, %arg1: i32) -> (i32, i32) {
    %c0_i32 = arith.constant 0 : i32
    %c0_i32_0 = arith.constant 0 : i32
    %c0_i32_1 = arith.constant 0 : i32
    return %c0_i32, %c0_i32_0 : i32, i32
  }
  func.func @transform_4(%arg0: i32, %arg1: i32) -> (i32, i32, i32) {
    %c0_i32 = arith.constant 0 : i32
    %c0_i32_0 = arith.constant 0 : i32
    %c0_i32_1 = arith.constant 0 : i32
    return %arg0, %c0_i32, %c0_i32_0 : i32, i32, i32
  }
  func.func @transform_5(%arg0: i32, %arg1: i32) -> (i32, i32, i32) {
    %c0_i32 = arith.constant 0 : i32
    %c0_i32_0 = arith.constant 0 : i32
    %c0_i32_1 = arith.constant 0 : i32
    return %arg0, %c0_i32, %c0_i32_0 : i32, i32, i32
  }
  func.func @transform_6(%arg0: i32, %arg1: i32) -> (i32, i32, i32) {
    %c0_i32 = arith.constant 0 : i32
    %c0_i32_0 = arith.constant 0 : i32
    %c0_i32_1 = arith.constant 0 : i32
    return %arg0, %c0_i32, %c0_i32_0 : i32, i32, i32
  }
}

module attributes {stable_mosaic.version = 11 : i64} {
  func.func @kernel(%arg0: i32, %arg1: i32, %arg2: memref<8x256xf32, #tpu.memory_space<vmem>>, %arg3: memref<8x256xf32, #tpu.memory_space<vmem>>, %arg4: memref<256x256xbf16, #tpu.memory_space<vmem>>, %arg5: memref<256x256xbf16, #tpu.memory_space<vmem>>, %arg6: memref<1x8x128xf32, #tpu.memory_space<vmem>>, %arg7: memref<1x8x128xf32, #tpu.memory_space<vmem>>, %arg8: memref<1x8x128xf32, #tpu.memory_space<vmem>>, %arg9: memref<1x8x256xf32, #tpu.memory_space<vmem>>, %arg10: memref<1x8x256xf32, #tpu.memory_space<vmem>>, %arg11: memref<1x8x256xf32, #tpu.memory_space<vmem>>) attributes {dimension_semantics = [#tpu.dimension_semantics<parallel>, #tpu.dimension_semantics<arbitrary>], iteration_bounds = array<i64: 1, 1>, scalar_prefetch = 0 : i64, scratch_operands = 3 : i64, tpu.core_type = #tpu.core_type<tc>, window_params = [{transform_indices = @transform_0, window_bounds = array<i64: 8, 256>}, {transform_indices = @transform_1, window_bounds = array<i64: 8, 256>}, {pipeline_mode = #tpu.pipeline_mode<synchronous>, transform_indices = @transform_2, window_bounds = array<i64: 256, 256>}, {pipeline_mode = #tpu.pipeline_mode<synchronous>, transform_indices = @transform_3, window_bounds = array<i64: 256, 256>}, {transform_indices = @transform_4, window_bounds = array<i64: 1, 8, 128>}, {transform_indices = @transform_5, window_bounds = array<i64: 1, 8, 128>}, {transform_indices = @transform_6, window_bounds = array<i64: 1, 8, 128>}]} {
    %c0_i32 = arith.constant 0 : i32
    %0 = arith.cmpi eq, %arg1, %c0_i32 : i32
    %1 = arith.extui %0 : i1 to i32
    %c0_i32_0 = arith.constant 0 : i32
    %2 = arith.cmpi ne, %1, %c0_i32_0 : i32
    scf.if %2 {
      %cst_27 = arith.constant 0.000000e+00 : f32
      %51 = vector.broadcast %cst_27 : f32 to vector<8x256xf32>
      %52 = arith.index_cast %arg0 : i32 to index
      %c0_28 = arith.constant 0 : index
      %c0_29 = arith.constant 0 : index
      %53 = vector.load %arg9[%52, %c0_28, %c0_29] : memref<1x8x256xf32, #tpu.memory_space<vmem>>, vector<1x8x256xf32>
      %54 = vector.shape_cast %53 : vector<1x8x256xf32> to vector<8x256xf32>
      %55 = vector.shape_cast %51 : vector<8x256xf32> to vector<1x8x256xf32>
      tpu.vector_store %arg9[%52, %c0_28, %c0_29], %55 {strides = array<i32>} : memref<1x8x256xf32, #tpu.memory_space<vmem>>, vector<1x8x256xf32>,
      %cst_30 = arith.constant 0x7F800000 : f32
      %56 = vector.broadcast %cst_30 : f32 to vector<8x256xf32>
      %57 = arith.index_cast %arg0 : i32 to index
      %c0_31 = arith.constant 0 : index
      %c0_32 = arith.constant 0 : index
      %58 = vector.load %arg10[%57, %c0_31, %c0_32] : memref<1x8x256xf32, #tpu.memory_space<vmem>>, vector<1x8x256xf32>
      %59 = vector.shape_cast %58 : vector<1x8x256xf32> to vector<8x256xf32>
      %60 = vector.shape_cast %56 : vector<8x256xf32> to vector<1x8x256xf32>
      tpu.vector_store %arg10[%57, %c0_31, %c0_32], %60 {strides = array<i32>} : memref<1x8x256xf32, #tpu.memory_space<vmem>>, vector<1x8x256xf32>,
      %cst_33 = arith.constant 0xFF800000 : f32
      %61 = vector.broadcast %cst_33 : f32 to vector<8x256xf32>
      %62 = arith.index_cast %arg0 : i32 to index
      %c0_34 = arith.constant 0 : index
      %c0_35 = arith.constant 0 : index
      %63 = vector.load %arg11[%62, %c0_34, %c0_35] : memref<1x8x256xf32, #tpu.memory_space<vmem>>, vector<1x8x256xf32>
      %64 = vector.shape_cast %63 : vector<1x8x256xf32> to vector<8x256xf32>
      %65 = vector.shape_cast %61 : vector<8x256xf32> to vector<1x8x256xf32>
      tpu.vector_store %arg11[%62, %c0_34, %c0_35], %65 {strides = array<i32>} : memref<1x8x256xf32, #tpu.memory_space<vmem>>, vector<1x8x256xf32>,
    } else {
    }
    %c0 = arith.constant 0 : index
    %c0_1 = arith.constant 0 : index
    %3 = vector.load %arg3[%c0, %c0_1] : memref<8x256xf32, #tpu.memory_space<vmem>>, vector<8x256xf32>
    %c0_2 = arith.constant 0 : index
    %c0_3 = arith.constant 0 : index
    %4 = vector.load %arg2[%c0_2, %c0_3] : memref<8x256xf32, #tpu.memory_space<vmem>>, vector<8x256xf32>
    %5 = arith.subf %3, %4 : vector<8x256xf32>
    %6 = arith.truncf %5 : vector<8x256xf32> to vector<8x256xbf16>
    %c0_4 = arith.constant 0 : index
    %c0_5 = arith.constant 0 : index
    %7 = vector.load %arg4[%c0_4, %c0_5] : memref<256x256xbf16, #tpu.memory_space<vmem>>, vector<256x256xbf16>
    %cst = arith.constant dense<0.000000e+00> : vector<8x256xf32>
    %8 = tpu.matmul %6, %7, %cst {dimension_numbers = #tpu.dot_dimension_numbers<[1], [0], [0], [1], [0, 0, 1, 1], [], []>} : vector<8x256xbf16>, vector<256x256xbf16>, vector<8x256xf32> -> vector<8x256xf32>
    %c0_6 = arith.constant 0 : index
    %c0_7 = arith.constant 0 : index
    %9 = vector.load %arg5[%c0_6, %c0_7] : memref<256x256xbf16, #tpu.memory_space<vmem>>, vector<256x256xbf16>
    %cst_8 = arith.constant dense<0.000000e+00> : vector<8x256xf32>
    %10 = tpu.matmul %6, %9, %cst_8 {dimension_numbers = #tpu.dot_dimension_numbers<[1], [0], [0], [1], [0, 0, 1, 1], [], []>} : vector<8x256xbf16>, vector<256x256xbf16>, vector<8x256xf32> -> vector<8x256xf32>
    %11 = arith.mulf %8, %8 : vector<8x256xf32>
    %12 = arith.mulf %10, %10 : vector<8x256xf32>
    %13 = arith.addf %11, %12 : vector<8x256xf32>
    %14 = math.sqrt %13 : vector<8x256xf32>
    %cst_9 = arith.constant 1.000000e+00 : f32
    %15 = vector.broadcast %cst_9 : f32 to vector<8x256xf32>
    %16 = arith.addf %14, %15 : vector<8x256xf32>
    %17 = math.log %16 : vector<8x256xf32>
    %18 = arith.index_cast %arg0 : i32 to index
    %c0_10 = arith.constant 0 : index
    %c0_11 = arith.constant 0 : index
    %19 = vector.load %arg9[%18, %c0_10, %c0_11] : memref<1x8x256xf32, #tpu.memory_space<vmem>>, vector<1x8x256xf32>
    %20 = vector.shape_cast %19 : vector<1x8x256xf32> to vector<8x256xf32>
    %21 = vector.shape_cast %17 : vector<8x256xf32> to vector<1x8x256xf32>
    %cst_12 = arith.constant dense<0.000000e+00> : vector<8x256xf32>
    %22 = vector.multi_reduction <add>, %21, %cst_12 [0] : vector<1x8x256xf32> to vector<8x256xf32>
    %23 = arith.addf %20, %22 : vector<8x256xf32>
    %24 = arith.index_cast %arg0 : i32 to index
    %c0_13 = arith.constant 0 : index
    %c0_14 = arith.constant 0 : index
    %25 = vector.load %arg9[%24, %c0_13, %c0_14] : memref<1x8x256xf32, #tpu.memory_space<vmem>>, vector<1x8x256xf32>
    %26 = vector.shape_cast %25 : vector<1x8x256xf32> to vector<8x256xf32>
    %27 = vector.shape_cast %23 : vector<8x256xf32> to vector<1x8x256xf32>
    tpu.vector_store %arg9[%24, %c0_13, %c0_14], %27 {strides = array<i32>} : memref<1x8x256xf32, #tpu.memory_space<vmem>>, vector<1x8x256xf32>,
    %28 = arith.index_cast %arg0 : i32 to index
    %c0_15 = arith.constant 0 : index
    %c0_16 = arith.constant 0 : index
    %29 = vector.load %arg10[%28, %c0_15, %c0_16] : memref<1x8x256xf32, #tpu.memory_space<vmem>>, vector<1x8x256xf32>
    %30 = vector.shape_cast %29 : vector<1x8x256xf32> to vector<8x256xf32>
    %31 = vector.shape_cast %17 : vector<8x256xf32> to vector<1x8x256xf32>
    %cst_17 = arith.constant dense<0x7F800000> : vector<8x256xf32>
    %32 = vector.multi_reduction <minimumf>, %31, %cst_17 [0] : vector<1x8x256xf32> to vector<8x256xf32>
    %33 = arith.minimumf %30, %32 : vector<8x256xf32>
    %34 = arith.index_cast %arg0 : i32 to index
    %c0_18 = arith.constant 0 : index
    %c0_19 = arith.constant 0 : index
    %35 = vector.load %arg10[%34, %c0_18, %c0_19] : memref<1x8x256xf32, #tpu.memory_space<vmem>>, vector<1x8x256xf32>
    %36 = vector.shape_cast %35 : vector<1x8x256xf32> to vector<8x256xf32>
    %37 = vector.shape_cast %33 : vector<8x256xf32> to vector<1x8x256xf32>
    tpu.vector_store %arg10[%34, %c0_18, %c0_19], %37 {strides = array<i32>} : memref<1x8x256xf32, #tpu.memory_space<vmem>>, vector<1x8x256xf32>,
    %38 = arith.index_cast %arg0 : i32 to index
    %c0_20 = arith.constant 0 : index
    %c0_21 = arith.constant 0 : index
    %39 = vector.load %arg11[%38, %c0_20, %c0_21] : memref<1x8x256xf32, #tpu.memory_space<vmem>>, vector<1x8x256xf32>
    %40 = vector.shape_cast %39 : vector<1x8x256xf32> to vector<8x256xf32>
    %41 = vector.shape_cast %17 : vector<8x256xf32> to vector<1x8x256xf32>
    %cst_22 = arith.constant dense<0xFF800000> : vector<8x256xf32>
    %42 = vector.multi_reduction <maximumf>, %41, %cst_22 [0] : vector<1x8x256xf32> to vector<8x256xf32>
    %43 = arith.maximumf %40, %42 : vector<8x256xf32>
    %44 = arith.index_cast %arg0 : i32 to index
    %c0_23 = arith.constant 0 : index
    %c0_24 = arith.constant 0 : index
    %45 = vector.load %arg11[%44, %c0_23, %c0_24] : memref<1x8x256xf32, #tpu.memory_space<vmem>>, vector<1x8x256xf32>
    %46 = vector.shape_cast %45 : vector<1x8x256xf32> to vector<8x256xf32>
    %47 = vector.shape_cast %43 : vector<8x256xf32> to vector<1x8x256xf32>
    tpu.vector_store %arg11[%44, %c0_23, %c0_24], %47 {strides = array<i32>} : memref<1x8x256xf32, #tpu.memory_space<vmem>>, vector<1x8x256xf32>,
    %c0_i32_25 = arith.constant 0 : i32
    %48 = arith.cmpi eq, %arg1, %c0_i32_25 : i32
    %49 = arith.extui %48 : i1 to i32
    %c0_i32_26 = arith.constant 0 : i32
    %50 = arith.cmpi ne, %49, %c0_i32_26 : i32
    scf.if %50 {
      %51 = arith.index_cast %arg0 : i32 to index
      %c0_27 = arith.constant 0 : index
      %c0_28 = arith.constant 0 : index
      %52 = vector.load %arg9[%51, %c0_27, %c0_28] : memref<1x8x256xf32, #tpu.memory_space<vmem>>, vector<1x8x256xf32>
      %53 = vector.shape_cast %52 : vector<1x8x256xf32> to vector<8x256xf32>
      %54 = vector.shape_cast %53 : vector<8x256xf32> to vector<1x8x256xf32>
      %cst_29 = arith.constant dense<0.000000e+00> : vector<1xf32>
      %55 = vector.multi_reduction <add>, %54, %cst_29 [1, 2] : vector<1x8x256xf32> to vector<1xf32>
      %56 = vector.shape_cast %55 : vector<1xf32> to vector<1x1x1xf32>
      %57 = vector.extract %56[0, 0, 0] : f32 from vector<1x1x1xf32>
      %58 = vector.broadcast %57 : f32 to vector<1x8x128xf32>
      %c0_30 = arith.constant 0 : index
      %c0_31 = arith.constant 0 : index
      %c0_32 = arith.constant 0 : index
      %59 = vector.load %arg6[%c0_30, %c0_31, %c0_32] : memref<1x8x128xf32, #tpu.memory_space<vmem>>, vector<1x8x128xf32>
      tpu.vector_store %arg6[%c0_30, %c0_31, %c0_32], %58 {strides = array<i32>} : memref<1x8x128xf32, #tpu.memory_space<vmem>>, vector<1x8x128xf32>,
      %60 = arith.index_cast %arg0 : i32 to index
      %c0_33 = arith.constant 0 : index
      %c0_34 = arith.constant 0 : index
      %61 = vector.load %arg10[%60, %c0_33, %c0_34] : memref<1x8x256xf32, #tpu.memory_space<vmem>>, vector<1x8x256xf32>
      %62 = vector.shape_cast %61 : vector<1x8x256xf32> to vector<8x256xf32>
      %63 = vector.shape_cast %62 : vector<8x256xf32> to vector<1x8x256xf32>
      %cst_35 = arith.constant dense<0x7F800000> : vector<1xf32>
      %64 = vector.multi_reduction <minimumf>, %63, %cst_35 [1, 2] : vector<1x8x256xf32> to vector<1xf32>
      %65 = vector.shape_cast %64 : vector<1xf32> to vector<1x1x1xf32>
      %66 = vector.extract %65[0, 0, 0] : f32 from vector<1x1x1xf32>
      %67 = vector.broadcast %66 : f32 to vector<1x8x128xf32>
      %c0_36 = arith.constant 0 : index
      %c0_37 = arith.constant 0 : index
      %c0_38 = arith.constant 0 : index
      %68 = vector.load %arg7[%c0_36, %c0_37, %c0_38] : memref<1x8x128xf32, #tpu.memory_space<vmem>>, vector<1x8x128xf32>
      tpu.vector_store %arg7[%c0_36, %c0_37, %c0_38], %67 {strides = array<i32>} : memref<1x8x128xf32, #tpu.memory_space<vmem>>, vector<1x8x128xf32>,
      %69 = arith.index_cast %arg0 : i32 to index
      %c0_39 = arith.constant 0 : index
      %c0_40 = arith.constant 0 : index
      %70 = vector.load %arg11[%69, %c0_39, %c0_40] : memref<1x8x256xf32, #tpu.memory_space<vmem>>, vector<1x8x256xf32>
      %71 = vector.shape_cast %70 : vector<1x8x256xf32> to vector<8x256xf32>
      %72 = vector.shape_cast %71 : vector<8x256xf32> to vector<1x8x256xf32>
      %cst_41 = arith.constant dense<0xFF800000> : vector<1xf32>
      %73 = vector.multi_reduction <maximumf>, %72, %cst_41 [1, 2] : vector<1x8x256xf32> to vector<1xf32>
      %74 = vector.shape_cast %73 : vector<1xf32> to vector<1x1x1xf32>
      %75 = vector.extract %74[0, 0, 0] : f32 from vector<1x1x1xf32>
      %76 = vector.broadcast %75 : f32 to vector<1x8x128xf32>
      %c0_42 = arith.constant 0 : index
      %c0_43 = arith.constant 0 : index
      %c0_44 = arith.constant 0 : index
      %77 = vector.load %arg8[%c0_42, %c0_43, %c0_44] : memref<1x8x128xf32, #tpu.memory_space<vmem>>, vector<1x8x128xf32>
      tpu.vector_store %arg8[%c0_42, %c0_43, %c0_44], %76 {strides = array<i32>} : memref<1x8x128xf32, #tpu.memory_space<vmem>>, vector<1x8x128xf32>,
    } else {
    }
    return
  }
  func.func @transform_0(%arg0: i32, %arg1: i32) -> (i32, i32) {
    %c1_i32 = arith.constant 1 : i32
    %0 = arith.muli %arg0, %c1_i32 : i32
    %1 = arith.addi %0, %arg1 : i32
    %c0_i32 = arith.constant 0 : i32
    %c0_i32_0 = arith.constant 0 : i32
    return %1, %c0_i32 : i32, i32
  }
  func.func @transform_1(%arg0: i32, %arg1: i32) -> (i32, i32) {
    %c1_i32 = arith.constant 1 : i32
    %0 = arith.muli %arg0, %c1_i32 : i32
    %1 = arith.addi %0, %arg1 : i32
    %c0_i32 = arith.constant 0 : i32
    %c0_i32_0 = arith.constant 0 : i32
    return %1, %c0_i32 : i32, i32
  }
  func.func @transform_2(%arg0: i32, %arg1: i32) -> (i32, i32) {
    %c0_i32 = arith.constant 0 : i32
    %c0_i32_0 = arith.constant 0 : i32
    %c0_i32_1 = arith.constant 0 : i32
    return %c0_i32, %c0_i32_0 : i32, i32
  }
  func.func @transform_3(%arg0: i32, %arg1: i32) -> (i32, i32) {
    %c0_i32 = arith.constant 0 : i32
    %c0_i32_0 = arith.constant 0 : i32
    %c0_i32_1 = arith.constant 0 : i32
    return %c0_i32, %c0_i32_0 : i32, i32
  }
  func.func @transform_4(%arg0: i32, %arg1: i32) -> (i32, i32, i32) {
    %c0_i32 = arith.constant 0 : i32
    %c0_i32_0 = arith.constant 0 : i32
    %c0_i32_1 = arith.constant 0 : i32
    return %arg0, %c0_i32, %c0_i32_0 : i32, i32, i32
  }
  func.func @transform_5(%arg0: i32, %arg1: i32) -> (i32, i32, i32) {
    %c0_i32 = arith.constant 0 : i32
    %c0_i32_0 = arith.constant 0 : i32
    %c0_i32_1 = arith.constant 0 : i32
    return %arg0, %c0_i32, %c0_i32_0 : i32, i32, i32
  }
  func.func @transform_6(%arg0: i32, %arg1: i32) -> (i32, i32, i32) {
    %c0_i32 = arith.constant 0 : i32
    %c0_i32_0 = arith.constant 0 : i32
    %c0_i32_1 = arith.constant 0 : i32
    return %arg0, %c0_i32, %c0_i32_0 : i32, i32, i32
  }
}

</mosaic_0001>

<bundles_post_ra>
// kernel: tpu_custom_call.1
= control target key start
LH: loop header
LB: loop body
LE: loop exit
PB: predicated region body
PF: predicated region fallthrough
CT: control target
= control target key end

     0   :  { %12 = vsyncpa [#allocation6], 0  ;;  %s1198_s0 = inlined_call_operand.hbm [shape: f32[8,256], index: 0, kind: input, shape index: {}]   ;;  %s1199_s1 = inlined_call_operand.hbm [shape: f32[8,256], index: 1, kind: input, shape index: {}]   ;;  %s1200_s2 = inlined_call_operand.hbm [shape: bf16[256,256], index: 2, kind: input, shape index: {}]   ;;  %s1201_s3 = inlined_call_operand.hbm [shape: bf16[256,256], index: 3, kind: input, shape index: {}]   ;;  %s1202_s4 = inlined_call_operand.hbm [shape: f32[1,8,128], index: 4, kind: output, shape index: {0}]   ;;  %s1203_s5 = inlined_call_operand.hbm [shape: f32[1,8,128], index: 5, kind: output, shape index: {1}]   ;;  %s1204_s6 = inlined_call_operand.hbm [shape: f32[1,8,128], index: 6, kind: output, shape index: {2}]  }
   0x1   :  { %13 = vsyncpa [#allocation9], 0 }
   0x2   :  { %14 = vsyncpa [#allocation12], 0 }
   0x3   :  { %15 = vsyncpa [#allocation7], 0 }
   0x4   :  { %16 = vsyncpa [#allocation15], 0  ;;  %s1063_s21 = smov [#allocation8]   ;;  %s1064_s23 = smov [#allocation5]  }
   0x5   :  { %s41_s22 = sshll.u32 %s1063_s21, 4  ;;  %s27_s24 = sshll.u32 %s1064_s23, 4  ;;  %s42_s22 = int_to_ptr.vmem [resolvable:$true] %s41_s22  ;;  %s28_s24 = int_to_ptr.vmem [resolvable:$true] %s27_s24 }
   0x6   :  { %s899_s27 = scalar_lea.hbm %s1199_s1, 256 }
   0x7   :  { %p900_p0 = scmp.ne.s32.totalorder %s1199_s1, %s899_s27  ;;  %p903_p1 = scmp.lt.u32.totalorder %s899_s27, %s1199_s1 }
   0x9   :  { %p905_p2 = pnand %p903_p1, %p900_p0 }
   0xb   :  { %908 = shalt.err (!%p905_p2)
}
   0xc   :  { %s909_s8 = scalar_lea.vmem %s42_s22, 256  ;;  %p914_p4 = scmp.lt.s32.totalorder %s42_s22, %s42_s22 }
   0xd   :  { %p910_p3 = scmp.ne.s32.totalorder %s42_s22, %s909_s8  ;;  %p915_p5 = scmp.lt.s32.totalorder %s909_s8, %s909_s8 }
   0xf   :  { %p916_p6 = por %p915_p5, %p914_p4 }
  0x11   :  { %p917_p7 = pnand %p916_p6, %p910_p3 }
  0x13   :  { %920 = shalt.err (!%p917_p7)
}
  0x14   :  { %44 = dma.hbm_to_vmem [thread:$0]  %s1199_s1, 256, %s42_s22, [#allocation9]  }
  0x15   :  { %s921_s13 = scalar_lea.hbm %s1198_s0, 256 }
  0x16   :  { %p922_p8 = scmp.ne.s32.totalorder %s1198_s0, %s921_s13  ;;  %p925_p9 = scmp.lt.u32.totalorder %s921_s13, %s1198_s0 }
  0x18   :  { %p927_p10 = pnand %p925_p9, %p922_p8 }
  0x1a   :  { %930 = shalt.err (!%p927_p10)
}
  0x1b   :  { %s931_s18 = scalar_lea.vmem %s28_s24, 256  ;;  %p936_p12 = scmp.lt.s32.totalorder %s28_s24, %s28_s24 }
  0x1c   :  { %p932_p11 = scmp.ne.s32.totalorder %s28_s24, %s931_s18  ;;  %p937_p13 = scmp.lt.s32.totalorder %s931_s18, %s931_s18 }
  0x1e   :  { %p938_p0 = por %p937_p13, %p936_p12 }
  0x20   :  { %p939_p1 = pnand %p938_p0, %p932_p11 }
  0x22   :  { %942 = shalt.err (!%p939_p1)
}
  0x23   :  { %30 = dma.hbm_to_vmem [thread:$0]  %s1198_s0, 256, %s28_s24, [#allocation6]  }
  0x24   :  { %s1065_s20 = smov [#allocation10]   ;;  %s943_s25 = scalar_lea.hbm %s1200_s2, 4096 }
  0x25   :  { %s50_s21 = sshll.u32 %s1065_s20, 4  ;;  %p944_p2 = scmp.ne.s32.totalorder %s1200_s2, %s943_s25  ;;  %s51_s21 = int_to_ptr.vmem [resolvable:$true] %s50_s21 }
  0x26   :  { %p947_p3 = scmp.lt.u32.totalorder %s943_s25, %s1200_s2 }
  0x28   :  { %p949_p4 = pnand %p947_p3, %p944_p2 }
  0x2a   :  { %952 = shalt.err (!%p949_p4)
}
  0x2b   :  { %s953_s30 = scalar_lea.vmem %s51_s21, 4096  ;;  %p958_p6 = scmp.lt.s32.totalorder %s51_s21, %s51_s21 }
  0x2c   :  { %p954_p5 = scmp.ne.s32.totalorder %s51_s21, %s953_s30  ;;  %p959_p7 = scmp.lt.s32.totalorder %s953_s30, %s953_s30 }
  0x2e   :  { %p960_p8 = por %p959_p7, %p958_p6 }
  0x30   :  { %p961_p9 = pnand %p960_p8, %p954_p5 }
  0x32   :  { %964 = shalt.err (!%p961_p9)
}
  0x33   :  { %s1066_s0 = smov 128   ;;  %s1067_s24 = smov 8  }
  0x34   :  { %56 = dma.hbm_to_vmem [thread:$0]  %s1200_s2, 4096, %s51_s21, [#allocation9], %s1066_s0, %s1066_s0, %s1067_s24  }
  0x35   :  { %s1068_s9 = smov [#allocation11]   ;;  %s965_s13 = scalar_lea.hbm %s1201_s3, 4096 }
  0x36   :  { %s62_s10 = sshll.u32 %s1068_s9, 4  ;;  %p966_p10 = scmp.ne.s32.totalorder %s1201_s3, %s965_s13  ;;  %s63_s10 = int_to_ptr.vmem [resolvable:$true] %s62_s10 }
  0x37   :  { %p969_p11 = scmp.lt.u32.totalorder %s965_s13, %s1201_s3 }
  0x39   :  { %p971_p12 = pnand %p969_p11, %p966_p10 }
  0x3b   :  { %974 = shalt.err (!%p971_p12)
}
  0x3c   :  { %s975_s18 = scalar_lea.vmem %s63_s10, 4096  ;;  %p980_p0 = scmp.lt.s32.totalorder %s63_s10, %s63_s10 }
  0x3d   :  { %p976_p13 = scmp.ne.s32.totalorder %s63_s10, %s975_s18  ;;  %p981_p1 = scmp.lt.s32.totalorder %s975_s18, %s975_s18 }
  0x3f   :  { %p982_p2 = por %p981_p1, %p980_p0 }
  0x41   :  { %p983_p3 = pnand %p982_p2, %p976_p13 }
  0x43   :  { %986 = shalt.err (!%p983_p3)
}
  0x44   :  { %68 = dma.hbm_to_vmem [thread:$0]  %s1201_s3, 4096, %s63_s10, [#allocation12], %s1066_s0, %s1066_s0, %s1067_s24  }
  0x45   :  { %1053 = dma.done.wait [#allocation6], 256  }
  0x46   :  { %1054 = vsyncadd [#allocation6], 4294967040 }
  0x47   :  { %1055 = dma.done.wait [#allocation9], 4352  }
  0x48   :  { %1056 = vsyncadd [#allocation9], 4294962944 }
  0x49   :  { %1057 = dma.done.wait [#allocation12], 4096  }
  0x4a   :  { %1058 = vsyncadd [#allocation12], 4294963200  ;;  %v795_v0 = vld [vmem:[#allocation10 + $0x4] ss:$8 sps:$4 sm:$0xff]   ;;  %v799_v2 = vld [vmem:[#allocation10] ss:$8 sps:$4 sm:$0xff]  }
  0x4b   :  { %v797_v1 = vld [vmem:[#allocation11 + $0x4] ss:$8 sps:$4 sm:$0xff]   ;;  %300 = vmatprep.subr.bf16.mxu0 %v795_v0  ;;  %v800_v3 = vld [vmem:[#allocation11] ss:$8 sps:$4 sm:$0xff]   ;;  %v801_v4 = vld [vmem:[#allocation10 + $0x14] ss:$8 sps:$4 sm:$0xff]  }
  0x4c   :  { %533 = vmatprep.subr.bf16.mxu1 %v797_v1  ;;  %301 = vmatpush1.bf16.msra.mxu0 %v799_v2  ;;  %v803_v5 = vld [vmem:[#allocation11 + $0x14] ss:$8 sps:$4 sm:$0xff]   ;;  %v805_v6 = vld [vmem:[#allocation10 + $0x10] ss:$8 sps:$4 sm:$0xff]   ;;  %v807_v8 = vld [vmem:[#allocation10 + $0x24] ss:$8 sps:$4 sm:$0xff]  }
  0x4d   :  { %534 = vmatpush1.bf16.msra.mxu1 %v800_v3  ;;  %302 = vmatprep.subr.bf16.mxu0 %v801_v4  ;;  %v806_v7 = vld [vmem:[#allocation11 + $0x10] ss:$8 sps:$4 sm:$0xff]   ;;  %v809_v9 = vld [vmem:[#allocation11 + $0x24] ss:$8 sps:$4 sm:$0xff]   ;;  %v811_v10 = vld [vmem:[#allocation10 + $0x20] ss:$8 sps:$4 sm:$0xff]  }
  0x4e   :  { %535 = vmatprep.subr.bf16.mxu1 %v803_v5  ;;  %v812_v11 = vld [vmem:[#allocation11 + $0x20] ss:$8 sps:$4 sm:$0xff]   ;;  %v813_v12 = vld [vmem:[#allocation10 + $0x34] ss:$8 sps:$4 sm:$0xff]   ;;  %v817_v14 = vld [vmem:[#allocation10 + $0x30] ss:$8 sps:$4 sm:$0xff]  }
  0x4f   :  { %v815_v13 = vld [vmem:[#allocation11 + $0x34] ss:$8 sps:$4 sm:$0xff]   ;;  %v818_v15 = vld [vmem:[#allocation11 + $0x30] ss:$8 sps:$4 sm:$0xff]   ;;  %v819_v16 = vld [vmem:[#allocation10 + $0x44] ss:$8 sps:$4 sm:$0xff]  }
  0x50   :  { %303 = vmatpush1.bf16.msra.mxu0 %v805_v6  ;;  %v821_v17 = vld [vmem:[#allocation11 + $0x44] ss:$8 sps:$4 sm:$0xff]   ;;  %v823_v18 = vld [vmem:[#allocation10 + $0x40] ss:$8 sps:$4 sm:$0xff]   ;;  %v825_v20 = vld [vmem:[#allocation10 + $0x54] ss:$8 sps:$4 sm:$0xff]  }
  0x51   :  { %536 = vmatpush1.bf16.msra.mxu1 %v806_v7  ;;  %304 = vmatprep.subr.bf16.mxu0 %v807_v8  ;;  %v824_v19 = vld [vmem:[#allocation11 + $0x40] ss:$8 sps:$4 sm:$0xff]   ;;  %v827_v21 = vld [vmem:[#allocation11 + $0x54] ss:$8 sps:$4 sm:$0xff]   ;;  %v829_v22 = vld [vmem:[#allocation10 + $0x50] ss:$8 sps:$4 sm:$0xff]  }
  0x52   :  { %537 = vmatprep.subr.bf16.mxu1 %v809_v9  ;;  %v830_v23 = vld [vmem:[#allocation11 + $0x50] ss:$8 sps:$4 sm:$0xff]   ;;  %v831_v24 = vld [vmem:[#allocation10 + $0x64] ss:$8 sps:$4 sm:$0xff]   ;;  %v835_v26 = vld [vmem:[#allocation10 + $0x60] ss:$8 sps:$4 sm:$0xff]  }
  0x53   :  { %v833_v25 = vld [vmem:[#allocation11 + $0x64] ss:$8 sps:$4 sm:$0xff]   ;;  %v836_v27 = vld [vmem:[#allocation11 + $0x60] ss:$8 sps:$4 sm:$0xff]   ;;  %v837_v28 = vld [vmem:[#allocation10 + $0x74] ss:$8 sps:$4 sm:$0xff]  }
  0x54   :  { %305 = vmatpush1.bf16.msra.mxu0 %v811_v10  ;;  %v839_v29 = vld [vmem:[#allocation11 + $0x74] ss:$8 sps:$4 sm:$0xff]   ;;  %v841_v30 = vld [vmem:[#allocation10 + $0x70] ss:$8 sps:$4 sm:$0xff]   ;;  %v843_v32 = vld [vmem:[#allocation10 + $0x84] ss:$8 sps:$4 sm:$0xff]  }
  0x55   :  { %538 = vmatpush1.bf16.msra.mxu1 %v812_v11  ;;  %306 = vmatprep.subr.bf16.mxu0 %v813_v12  ;;  %v842_v31 = vld [vmem:[#allocation11 + $0x70] ss:$8 sps:$4 sm:$0xff]   ;;  %v845_v33 = vld [vmem:[#allocation11 + $0x84] ss:$8 sps:$4 sm:$0xff]   ;;  %v847_v34 = vld [vmem:[#allocation10 + $0x80] ss:$8 sps:$4 sm:$0xff]  }
  0x56   :  { %539 = vmatprep.subr.bf16.mxu1 %v815_v13  ;;  %v848_v35 = vld [vmem:[#allocation11 + $0x80] ss:$8 sps:$4 sm:$0xff]   ;;  %v849_v36 = vld [vmem:[#allocation10 + $0x94] ss:$8 sps:$4 sm:$0xff]   ;;  %v853_v38 = vld [vmem:[#allocation10 + $0x90] ss:$8 sps:$4 sm:$0xff]  }
  0x57   :  { %v851_v37 = vld [vmem:[#allocation11 + $0x94] ss:$8 sps:$4 sm:$0xff]   ;;  %v854_v39 = vld [vmem:[#allocation11 + $0x90] ss:$8 sps:$4 sm:$0xff]   ;;  %v855_v40 = vld [vmem:[#allocation10 + $0xa4] ss:$8 sps:$4 sm:$0xff]  }
  0x58   :  { %307 = vmatpush1.bf16.msra.mxu0 %v817_v14  ;;  %v857_v41 = vld [vmem:[#allocation11 + $0xa4] ss:$8 sps:$4 sm:$0xff]   ;;  %v859_v42 = vld [vmem:[#allocation10 + $0xa0] ss:$8 sps:$4 sm:$0xff]   ;;  %v861_v44 = vld [vmem:[#allocation10 + $0xb4] ss:$8 sps:$4 sm:$0xff]  }
  0x59   :  { %540 = vmatpush1.bf16.msra.mxu1 %v818_v15  ;;  %308 = vmatprep.subr.bf16.mxu0 %v819_v16  ;;  %v860_v43 = vld [vmem:[#allocation11 + $0xa0] ss:$8 sps:$4 sm:$0xff]   ;;  %v863_v45 = vld [vmem:[#allocation11 + $0xb4] ss:$8 sps:$4 sm:$0xff]   ;;  %v865_v48 = vld [vmem:[#allocation10 + $0xb0] ss:$8 sps:$4 sm:$0xff]  }
  0x5a   :  { %541 = vmatprep.subr.bf16.mxu1 %v821_v17  ;;  %v101_v46 = vld [vmem:[#allocation8 + $0x8] sm:$0xff]  ;;  %v103_v47 = vld [vmem:[#allocation5 + $0x8] sm:$0xff]  ;;  %v100_v0 = vld [vmem:[#allocation8] sm:$0xff]  ;;  %s1069_s3 = smov [#allocation13]   ;;  %s1070_s21 = smov [#allocation14]  }
  0x5b   :  { %v866_v49 = vld [vmem:[#allocation11 + $0xb0] ss:$8 sps:$4 sm:$0xff]   ;;  %v105_v50 = vsub.f32 %v101_v46, %v103_v47  ;;  %v867_v51 = vld [vmem:[#allocation10 + $0xc4] ss:$8 sps:$4 sm:$0xff]   ;;  %v871_v54 = vld [vmem:[#allocation10 + $0xc0] ss:$8 sps:$4 sm:$0xff]  }
  0x5c   :  { %309 = vmatpush1.bf16.msra.mxu0 %v823_v18  ;;  %v869_v52 = vld [vmem:[#allocation11 + $0xc4] ss:$8 sps:$4 sm:$0xff]   ;;  %v872_v55 = vld [vmem:[#allocation11 + $0xc0] ss:$8 sps:$4 sm:$0xff]   ;;  %v873_v56 = vld [vmem:[#allocation10 + $0xd4] ss:$8 sps:$4 sm:$0xff]  }
  0x5d   :  { %542 = vmatpush1.bf16.msra.mxu1 %v824_v19  ;;  %310 = vmatprep.subr.bf16.mxu0 %v825_v20  ;;  %v107_v53 = vpack.c.bf16 %v105_v50, %v105_v50  ;;  %v875_v57 = vld [vmem:[#allocation11 + $0xd4] ss:$8 sps:$4 sm:$0xff]   ;;  %v877_v58 = vld [vmem:[#allocation10 + $0xd0] ss:$8 sps:$4 sm:$0xff]   ;;  %v879_v60 = vld [vmem:[#allocation10 + $0xe4] ss:$8 sps:$4 sm:$0xff]  }
  0x5e   :  { %543 = vmatprep.subr.bf16.mxu1 %v827_v21  ;;  %v878_v59 = vld [vmem:[#allocation11 + $0xd0] ss:$8 sps:$4 sm:$0xff]   ;;  %v881_v61 = vld [vmem:[#allocation11 + $0xe4] ss:$8 sps:$4 sm:$0xff]   ;;  %v883_v62 = vld [vmem:[#allocation10 + $0xe0] ss:$8 sps:$4 sm:$0xff]  }
  0x5f   :  { %332 = vmatprep.mubr.bf16.mxu0 %v107_v53  ;;  %565 = vmatprep.mubr.bf16.mxu1 %v107_v53  ;;  %v884_v63 = vld [vmem:[#allocation11 + $0xe0] ss:$8 sps:$4 sm:$0xff]   ;;  %v885_v2 = vld [vmem:[#allocation10 + $0xf4] ss:$8 sps:$4 sm:$0xff]   ;;  %v889_v5 = vld [vmem:[#allocation10 + $0xf0] ss:$8 sps:$4 sm:$0xff]  }
  0x60   :  { %311 = vmatpush1.bf16.msra.mxu0 %v829_v22  ;;  %v102_v1 = vld [vmem:[#allocation5] sm:$0xff]  ;;  %v887_v3 = vld [vmem:[#allocation11 + $0xf4] ss:$8 sps:$4 sm:$0xff]   ;;  %v890_v6 = vld [vmem:[#allocation11 + $0xf0] ss:$8 sps:$4 sm:$0xff]   ;;  %s678_s19 = sshll.u32 %s1069_s3, 4  ;;  %s679_s19 = int_to_ptr.vmem [resolvable:$true] %s678_s19 }
  0x61   :  { %544 = vmatpush1.bf16.msra.mxu1 %v830_v23  ;;  %312 = vmatprep.subr.bf16.mxu0 %v831_v24  ;;  %v104_v4 = vsub.f32 %v100_v0, %v102_v1  ;;  %s688_s22 = sshll.u32 %s1070_s21, 4  ;;  %s1071_s23 = smov [#allocation16]   ;;  %s689_s22 = int_to_ptr.vmem [resolvable:$true] %s688_s22 }
  0x62   :  { %545 = vmatprep.subr.bf16.mxu1 %v833_v25  ;;  %s698_s25 = sshll.u32 %s1071_s23, 4  ;;  %s987_s26 = scalar_lea.vmem %s679_s19, 128  ;;  %s1167_s25 = int_to_ptr.vmem [resolvable:$true] %s698_s25 }
  0x63   :  { %v106_v7 = vpack.c.bf16 %v104_v4, %v104_v4  ;;  %p988_p4 = scmp.ne.s32.totalorder %s679_s19, %s987_s26  ;;  %p992_p5 = scmp.lt.s32.totalorder %s679_s19, %s679_s19 }
  0x64   :  { %313 = vmatpush1.bf16.msra.mxu0 %v835_v26  ;;  %p993_p6 = scmp.lt.s32.totalorder %s987_s26, %s987_s26 }
  0x65   :  { %546 = vmatpush1.bf16.msra.mxu1 %v836_v27  ;;  %314 = vmatprep.subr.bf16.mxu0 %v837_v28 }
  0x66   :  { %547 = vmatprep.subr.bf16.mxu1 %v839_v29  ;;  %p994_p7 = por %p993_p6, %p992_p5 }
  0x68   :  { %315 = vmatpush1.bf16.msra.mxu0 %v841_v30  ;;  %p995_p8 = pnand %p994_p7, %p988_p4 }
  0x69   :  { %548 = vmatpush1.bf16.msra.mxu1 %v842_v31  ;;  %316 = vmatprep.subr.bf16.mxu0 %v843_v32 }
  0x6a   :  { %549 = vmatprep.subr.bf16.mxu1 %v845_v33 }
  0x6c   :  { %317 = vmatpush1.bf16.msra.mxu0 %v847_v34 }
  0x6d   :  { %550 = vmatpush1.bf16.msra.mxu1 %v848_v35  ;;  %318 = vmatprep.subr.bf16.mxu0 %v849_v36 }
  0x6e   :  { %551 = vmatprep.subr.bf16.mxu1 %v851_v37 }
  0x70   :  { %319 = vmatpush1.bf16.msra.mxu0 %v853_v38 }
  0x71   :  { %552 = vmatpush1.bf16.msra.mxu1 %v854_v39  ;;  %320 = vmatprep.subr.bf16.mxu0 %v855_v40 }
  0x72   :  { %553 = vmatprep.subr.bf16.mxu1 %v857_v41 }
  0x74   :  { %321 = vmatpush1.bf16.msra.mxu0 %v859_v42 }
  0x75   :  { %554 = vmatpush1.bf16.msra.mxu1 %v860_v43  ;;  %322 = vmatprep.subr.bf16.mxu0 %v861_v44 }
  0x76   :  { %555 = vmatprep.subr.bf16.mxu1 %v863_v45 }
  0x78   :  { %323 = vmatpush1.bf16.msra.mxu0 %v865_v48 }
  0x79   :  { %556 = vmatpush1.bf16.msra.mxu1 %v866_v49  ;;  %324 = vmatprep.subr.bf16.mxu0 %v867_v51 }
  0x7a   :  { %557 = vmatprep.subr.bf16.mxu1 %v869_v52 }
  0x7c   :  { %325 = vmatpush1.bf16.msra.mxu0 %v871_v54 }
  0x7d   :  { %558 = vmatpush1.bf16.msra.mxu1 %v872_v55  ;;  %326 = vmatprep.subr.bf16.mxu0 %v873_v56 }
  0x7e   :  { %559 = vmatprep.subr.bf16.mxu1 %v875_v57 }
  0x80   :  { %327 = vmatpush1.bf16.msra.mxu0 %v877_v58 }
  0x81   :  { %560 = vmatpush1.bf16.msra.mxu1 %v878_v59  ;;  %328 = vmatprep.subr.bf16.mxu0 %v879_v60 }
  0x82   :  { %561 = vmatprep.subr.bf16.mxu1 %v881_v61 }
  0x84   :  { %329 = vmatpush1.bf16.msra.mxu0 %v883_v62 }
  0x85   :  { %562 = vmatpush1.bf16.msra.mxu1 %v884_v63  ;;  %330 = vmatprep.subr.bf16.mxu0 %v885_v2 }
  0x86   :  { %563 = vmatprep.subr.bf16.mxu1 %v887_v3 }
  0x88   :  { %331 = vmatpush1.bf16.msra.mxu0 %v889_v5 }
  0x89   :  { %564 = vmatpush1.bf16.msra.mxu1 %v890_v6 }
  0x8b   :  { %333 = vmatmul.mubr.bf16.vlgmr.msra.gmra.mrb[0].mxu0 %v106_v7 }
  0x8c   :  { %566 = vmatmul.mubr.bf16.vlgmr.msra.gmra.mrb[0].mxu1 %v106_v7 }
 0x15e   :  { %v334_v8 = vpop.f32.mrb[0].mxu0 }
 0x15f   :  { %v567_v9 = vpop.f32.mrb[0].mxu1  ;;  %v574_v10 = vmul.f32 %v334_v8, %v334_v8  ;;  %v336_v12 = vpop.f32.mrb[1].mxu0 }
 0x160   :  { %v576_v11 = vmul.f32 %v567_v9, %v567_v9  ;;  %v569_v13 = vpop.f32.mrb[1].mxu1  ;;  %v575_v14 = vmul.f32 %v336_v12, %v336_v12  ;;  %v338_v16 = vpop.f32.mrb[2].mxu0 }
 0x161   :  { %v577_v15 = vmul.f32 %v569_v13, %v569_v13  ;;  %v571_v17 = vpop.f32.mrb[2].mxu1  ;;  %v339_v19 = vpop.f32.mrb[3].mxu0 }
 0x162   :  { %v578_v18 = vadd.f32 %v576_v11, %v574_v10  ;;  %v572_v20 = vpop.f32.mrb[3].mxu1 }
 0x163   :  { %v579_v21 = vadd.f32 %v577_v15, %v575_v14 }
 0x164   :  { %891 = vrsqrt.f32 %v578_v18  ;;  %vm582_vm0 = vcmp.eq.f32.partialorder %v578_v18, inf  ;;  %v585_v25 = vand.u32 2147483648, %v578_v18  ;;  %vm584_vm1 = vcmp.eq.f32.partialorder %v578_v18, 0.0 }
 0x165   :  { %893 = vrsqrt.f32 %v579_v21  ;;  %vm589_vm2 = vcmp.eq.f32.partialorder %v579_v21, inf  ;;  %v592_v28 = vand.u32 2147483648, %v579_v21  ;;  %vm591_vm3 = vcmp.eq.f32.partialorder %v579_v21, 0.0 }
 0x16e   :  { %v892_v22 = vpop.eup %891 }
 0x16f   :  { %v894_v23 = vpop.eup %893  ;;  %v581_v24 = vmul.f32 %v892_v22, %v578_v18 }
 0x170   :  { %v588_v26 = vmul.f32 %v894_v23, %v579_v21 }
 0x171   :  { %v583_v27 = vsel %vm582_vm0, %v578_v18, %v581_v24 }
 0x172   :  { %v586_v29 = vsel %vm584_vm1, %v585_v25, %v583_v27  ;;  %v590_v30 = vsel %vm589_vm2, %v579_v21, %v588_v26 }
 0x173   :  { %v593_v31 = vsel %vm591_vm3, %v592_v28, %v590_v30  ;;  %v594_v32 = vadd.f32 1.0, %v586_v29 }
 0x174   :  { %v595_v33 = vadd.f32 1.0, %v593_v31 }
 0x175   :  { %895 = vlog2.f32 %v594_v32 }
 0x176   :  { %897 = vlog2.f32 %v595_v33 }
 0x17f   :  { %v896_v34 = vpop.eup %895 }
 0x180   :  { %v898_v35 = vpop.eup %897  ;;  %v597_v36 = vmul.f32 0.6931472, %v896_v34 }
 0x181   :  { %v599_v37 = vmul.f32 0.6931472, %v898_v35 }
 0x183   :  { %v660_v38 = vmax.f32 %v597_v36, %v599_v37  ;;  %v632_v39 = vadd.f32 %v599_v37, %v597_v36  ;;  %v646_v40 = vmin.f32 %v597_v36, %v599_v37 }
 0x185   :  { %661 = vmax.xlane.f32.xlu1 %v660_v38  ;;  %633 = vadd.xlane.f32.xlu0 %v632_v39 }
 0x189   :  { %647 = vmin.xlane.f32.xlu0 %v646_v40 }
 0x212   :  { %v662_v41 = vpop.xlane.xlu1 %661  ;;  %v634_v42 = vpop.xlane.xlu0 %633 }
 0x213   :  { %v663_v43 = vrot.slane %v662_v41, 4  ;;  %v635_v44 = vrot.slane %v634_v42, 4 }
 0x215   :  { %v664_v45 = vmax.f32 %v662_v41, %v663_v43  ;;  %v636_v46 = vadd.f32 %v635_v44, %v634_v42 }
 0x216   :  { %v648_v47 = vpop.xlane.xlu0 %647 }
 0x217   :  { %v665_v48 = vrot.slane %v664_v45, 2  ;;  %v637_v49 = vrot.slane %v636_v46, 2  ;;  %v649_v50 = vrot.slane %v648_v47, 4 }
 0x219   :  { %v650_v51 = vmin.f32 %v648_v47, %v649_v50  ;;  %v638_v52 = vadd.f32 %v637_v49, %v636_v46  ;;  %v666_v53 = vmax.f32 %v664_v45, %v665_v48 }
 0x21b   :  { %v651_v54 = vrot.slane %v650_v51, 2  ;;  %v639_v55 = vrot.slane %v638_v52, 1  ;;  %v667_v58 = vrot.slane %v666_v53, 1 }
 0x21d   :  { %v652_v56 = vmin.f32 %v650_v51, %v651_v54  ;;  %v640_v57 = vadd.f32 %v639_v55, %v638_v52  ;;  %v668_v61 = vmax.f32 %v666_v53, %v667_v58 }
 0x21f   :  { %780 = vpush %v640_v57  ;;  %v653_v59 = vrot.slane %v652_v56, 1 }
 0x221   :  { %v654_v60 = vmin.f32 %v652_v56, %v653_v59 }
 0x223   :  { %782 = vpush %v654_v60 }
 0x224   :  { %784 = vpush %v668_v61 }
 0x250   :  { %s781_s20 = spop %780 }
 0x251   :  { %v642_v62 = vstv %s781_s20 }
 0x252   :  { %643 = vst [vmem:[#allocation13] sm:$0xff] %v642_v62 }
 0x253   :  { %998 = shalt.err (!%p995_p8)
}
 0x254   :  { %s999_s29 = scalar_lea.hbm %s1202_s4, 128 }
 0x255   :  { %p1000_p9 = scmp.ne.s32.totalorder %s1202_s4, %s999_s29  ;;  %p1003_p10 = scmp.lt.u32.totalorder %s999_s29, %s1202_s4 }
 0x257   :  { %p1005_p11 = pnand %p1003_p10, %p1000_p9 }
 0x259   :  { %1008 = shalt.err (!%p1005_p11)
}
 0x25a   :  { %681 = dma.vmem_to_hbm [thread:$0]  %s679_s19, 128, %s1202_s4, [#allocation7]  }
 0x25b   :  { %s783_s10 = spop %782  ;;  %s1009_s12 = scalar_lea.vmem %s689_s22, 128 }
 0x25c   :  { %v656_v63 = vstv %s783_s10  ;;  %s785_s11 = spop %784  ;;  %p1010_p12 = scmp.ne.s32.totalorder %s689_s22, %s1009_s12 }
 0x25d   :  { %657 = vst [vmem:[#allocation14] sm:$0xff] %v656_v63  ;;  %v670_v0 = vstv %s785_s11  ;;  %p1014_p13 = scmp.lt.s32.totalorder %s689_s22, %s689_s22  ;;  %p1015_p0 = scmp.lt.s32.totalorder %s1009_s12, %s1009_s12 }
 0x25e   :  { %671 = vst [vmem:[#allocation16] sm:$0xff] %v670_v0 }
 0x25f   :  { %p1016_p1 = por %p1015_p0, %p1014_p13 }
 0x261   :  { %p1017_p2 = pnand %p1016_p1, %p1010_p12 }
 0x263   :  { %1020 = shalt.err (!%p1017_p2)
}
 0x264   :  { %s1021_s4 = scalar_lea.hbm %s1203_s5, 128 }
 0x265   :  { %p1022_p3 = scmp.ne.s32.totalorder %s1203_s5, %s1021_s4  ;;  %p1025_p4 = scmp.lt.u32.totalorder %s1021_s4, %s1203_s5 }
 0x267   :  { %p1027_p5 = pnand %p1025_p4, %p1022_p3 }
 0x269   :  { %1030 = shalt.err (!%p1027_p5)
}
 0x26a   :  { %691 = dma.vmem_to_hbm [thread:$0]  %s689_s22, 128, %s1203_s5, [#allocation15]  }
 0x26b   :  { %s1031_s3 = scalar_lea.vmem %s1167_s25, 128  ;;  %p1036_p7 = scmp.lt.s32.totalorder %s1167_s25, %s1167_s25 }
 0x26c   :  { %p1032_p6 = scmp.ne.s32.totalorder %s1167_s25, %s1031_s3  ;;  %p1037_p8 = scmp.lt.s32.totalorder %s1031_s3, %s1031_s3 }
 0x26e   :  { %p1038_p9 = por %p1037_p8, %p1036_p7 }
 0x270   :  { %p1039_p10 = pnand %p1038_p9, %p1032_p6 }
 0x272   :  { %1042 = shalt.err (!%p1039_p10)
}
 0x273   :  { %s1043_s21 = scalar_lea.hbm %s1204_s6, 128 }
 0x274   :  { %p1044_p11 = scmp.ne.s32.totalorder %s1204_s6, %s1043_s21  ;;  %p1047_p12 = scmp.lt.u32.totalorder %s1043_s21, %s1204_s6 }
 0x276   :  { %p1049_p13 = pnand %p1047_p12, %p1044_p11 }
 0x278   :  { %1052 = shalt.err (!%p1049_p13)
}
 0x279   :  { %701 = dma.vmem_to_hbm [thread:$0]  %s1167_s25, 128, %s1204_s6, [#allocation15]  }
 0x27a   :  { %1059 = dma.done.wait [#allocation7], 128  }
 0x27b   :  { %1060 = vsyncadd [#allocation7], 4294967168 }
 0x27c   :  { %1061 = dma.done.wait [#allocation15], 256  }
 0x27d   :  { %1062 = vsyncadd [#allocation15], 4294967040 }
 0x27e   :  { %711 = vsyncpa [#allocation6], 1 }
 0x27f   :  { %712 = vsyncpa [#allocation9], 1 }
 0x280   :  { %713 = vsyncpa [#allocation12], 1 }
 0x281   :  { %714 = vsyncpa [#allocation7], 1 }
 0x282   :  { %715 = vsyncpa [#allocation15], 1 }

// kernel: tpu_custom_call.1
= control target key start
LH: loop header
LB: loop body
LE: loop exit
PB: predicated region body
PF: predicated region fallthrough
CT: control target
= control target key end

     0   :  { %12 = vsyncpa [#allocation6], 0  ;;  %s1198_s0 = inlined_call_operand.hbm [shape: f32[8,256], index: 0, kind: input, shape index: {}]   ;;  %s1199_s1 = inlined_call_operand.hbm [shape: f32[8,256], index: 1, kind: input, shape index: {}]   ;;  %s1200_s2 = inlined_call_operand.hbm [shape: bf16[256,256], index: 2, kind: input, shape index: {}]   ;;  %s1201_s3 = inlined_call_operand.hbm [shape: bf16[256,256], index: 3, kind: input, shape index: {}]   ;;  %s1202_s4 = inlined_call_operand.hbm [shape: f32[1,8,128], index: 4, kind: output, shape index: {0}]   ;;  %s1203_s5 = inlined_call_operand.hbm [shape: f32[1,8,128], index: 5, kind: output, shape index: {1}]   ;;  %s1204_s6 = inlined_call_operand.hbm [shape: f32[1,8,128], index: 6, kind: output, shape index: {2}]  }
   0x1   :  { %13 = vsyncpa [#allocation9], 0 }
   0x2   :  { %14 = vsyncpa [#allocation12], 0 }
   0x3   :  { %15 = vsyncpa [#allocation7], 0 }
   0x4   :  { %16 = vsyncpa [#allocation15], 0  ;;  %s1063_s21 = smov [#allocation8]   ;;  %s1064_s23 = smov [#allocation5]  }
   0x5   :  { %s41_s22 = sshll.u32 %s1063_s21, 4  ;;  %s27_s24 = sshll.u32 %s1064_s23, 4  ;;  %s42_s22 = int_to_ptr.vmem [resolvable:$true] %s41_s22  ;;  %s28_s24 = int_to_ptr.vmem [resolvable:$true] %s27_s24 }
   0x6   :  { %s899_s27 = scalar_lea.hbm %s1199_s1, 256 }
   0x7   :  { %p900_p0 = scmp.ne.s32.totalorder %s1199_s1, %s899_s27  ;;  %p903_p1 = scmp.lt.u32.totalorder %s899_s27, %s1199_s1 }
   0x9   :  { %p905_p2 = pnand %p903_p1, %p900_p0 }
   0xb   :  { %908 = shalt.err (!%p905_p2)
}
   0xc   :  { %s909_s8 = scalar_lea.vmem %s42_s22, 256  ;;  %p914_p4 = scmp.lt.s32.totalorder %s42_s22, %s42_s22 }
   0xd   :  { %p910_p3 = scmp.ne.s32.totalorder %s42_s22, %s909_s8  ;;  %p915_p5 = scmp.lt.s32.totalorder %s909_s8, %s909_s8 }
   0xf   :  { %p916_p6 = por %p915_p5, %p914_p4 }
  0x11   :  { %p917_p7 = pnand %p916_p6, %p910_p3 }
  0x13   :  { %920 = shalt.err (!%p917_p7)
}
  0x14   :  { %44 = dma.hbm_to_vmem [thread:$0]  %s1199_s1, 256, %s42_s22, [#allocation9]  }
  0x15   :  { %s921_s13 = scalar_lea.hbm %s1198_s0, 256 }
  0x16   :  { %p922_p8 = scmp.ne.s32.totalorder %s1198_s0, %s921_s13  ;;  %p925_p9 = scmp.lt.u32.totalorder %s921_s13, %s1198_s0 }
  0x18   :  { %p927_p10 = pnand %p925_p9, %p922_p8 }
  0x1a   :  { %930 = shalt.err (!%p927_p10)
}
  0x1b   :  { %s931_s18 = scalar_lea.vmem %s28_s24, 256  ;;  %p936_p12 = scmp.lt.s32.totalorder %s28_s24, %s28_s24 }
  0x1c   :  { %p932_p11 = scmp.ne.s32.totalorder %s28_s24, %s931_s18  ;;  %p937_p13 = scmp.lt.s32.totalorder %s931_s18, %s931_s18 }
  0x1e   :  { %p938_p0 = por %p937_p13, %p936_p12 }
  0x20   :  { %p939_p1 = pnand %p938_p0, %p932_p11 }
  0x22   :  { %942 = shalt.err (!%p939_p1)
}
  0x23   :  { %30 = dma.hbm_to_vmem [thread:$0]  %s1198_s0, 256, %s28_s24, [#allocation6]  }
  0x24   :  { %s1065_s20 = smov [#allocation10]   ;;  %s943_s25 = scalar_lea.hbm %s1200_s2, 4096 }
  0x25   :  { %s50_s21 = sshll.u32 %s1065_s20, 4  ;;  %p944_p2 = scmp.ne.s32.totalorder %s1200_s2, %s943_s25  ;;  %s51_s21 = int_to_ptr.vmem [resolvable:$true] %s50_s21 }
  0x26   :  { %p947_p3 = scmp.lt.u32.totalorder %s943_s25, %s1200_s2 }
  0x28   :  { %p949_p4 = pnand %p947_p3, %p944_p2 }
  0x2a   :  { %952 = shalt.err (!%p949_p4)
}
  0x2b   :  { %s953_s30 = scalar_lea.vmem %s51_s21, 4096  ;;  %p958_p6 = scmp.lt.s32.totalorder %s51_s21, %s51_s21 }
  0x2c   :  { %p954_p5 = scmp.ne.s32.totalorder %s51_s21, %s953_s30  ;;  %p959_p7 = scmp.lt.s32.totalorder %s953_s30, %s953_s30 }
  0x2e   :  { %p960_p8 = por %p959_p7, %p958_p6 }
  0x30   :  { %p961_p9 = pnand %p960_p8, %p954_p5 }
  0x32   :  { %964 = shalt.err (!%p961_p9)
}
  0x33   :  { %s1066_s0 = smov 128   ;;  %s1067_s24 = smov 8  }
  0x34   :  { %56 = dma.hbm_to_vmem [thread:$0]  %s1200_s2, 4096, %s51_s21, [#allocation9], %s1066_s0, %s1066_s0, %s1067_s24  }
  0x35   :  { %s1068_s9 = smov [#allocation11]   ;;  %s965_s13 = scalar_lea.hbm %s1201_s3, 4096 }
  0x36   :  { %s62_s10 = sshll.u32 %s1068_s9, 4  ;;  %p966_p10 = scmp.ne.s32.totalorder %s1201_s3, %s965_s13  ;;  %s63_s10 = int_to_ptr.vmem [resolvable:$true] %s62_s10 }
  0x37   :  { %p969_p11 = scmp.lt.u32.totalorder %s965_s13, %s1201_s3 }
  0x39   :  { %p971_p12 = pnand %p969_p11, %p966_p10 }
  0x3b   :  { %974 = shalt.err (!%p971_p12)
}
  0x3c   :  { %s975_s18 = scalar_lea.vmem %s63_s10, 4096  ;;  %p980_p0 = scmp.lt.s32.totalorder %s63_s10, %s63_s10 }
  0x3d   :  { %p976_p13 = scmp.ne.s32.totalorder %s63_s10, %s975_s18  ;;  %p981_p1 = scmp.lt.s32.totalorder %s975_s18, %s975_s18 }
  0x3f   :  { %p982_p2 = por %p981_p1, %p980_p0 }
  0x41   :  { %p983_p3 = pnand %p982_p2, %p976_p13 }
  0x43   :  { %986 = shalt.err (!%p983_p3)
}
  0x44   :  { %68 = dma.hbm_to_vmem [thread:$0]  %s1201_s3, 4096, %s63_s10, [#allocation12], %s1066_s0, %s1066_s0, %s1067_s24  }
  0x45   :  { %1053 = dma.done.wait [#allocation6], 256  }
  0x46   :  { %1054 = vsyncadd [#allocation6], 4294967040 }
  0x47   :  { %1055 = dma.done.wait [#allocation9], 4352  }
  0x48   :  { %1056 = vsyncadd [#allocation9], 4294962944 }
  0x49   :  { %1057 = dma.done.wait [#allocation12], 4096  }
  0x4a   :  { %1058 = vsyncadd [#allocation12], 4294963200  ;;  %v795_v0 = vld [vmem:[#allocation10 + $0x4] ss:$8 sps:$4 sm:$0xff]   ;;  %v799_v2 = vld [vmem:[#allocation10] ss:$8 sps:$4 sm:$0xff]  }
  0x4b   :  { %v797_v1 = vld [vmem:[#allocation11 + $0x4] ss:$8 sps:$4 sm:$0xff]   ;;  %300 = vmatprep.subr.bf16.mxu0 %v795_v0  ;;  %v800_v3 = vld [vmem:[#allocation11] ss:$8 sps:$4 sm:$0xff]   ;;  %v801_v4 = vld [vmem:[#allocation10 + $0x14] ss:$8 sps:$4 sm:$0xff]  }
  0x4c   :  { %533 = vmatprep.subr.bf16.mxu1 %v797_v1  ;;  %301 = vmatpush1.bf16.msra.mxu0 %v799_v2  ;;  %v803_v5 = vld [vmem:[#allocation11 + $0x14] ss:$8 sps:$4 sm:$0xff]   ;;  %v805_v6 = vld [vmem:[#allocation10 + $0x10] ss:$8 sps:$4 sm:$0xff]   ;;  %v807_v8 = vld [vmem:[#allocation10 + $0x24] ss:$8 sps:$4 sm:$0xff]  }
  0x4d   :  { %534 = vmatpush1.bf16.msra.mxu1 %v800_v3  ;;  %302 = vmatprep.subr.bf16.mxu0 %v801_v4  ;;  %v806_v7 = vld [vmem:[#allocation11 + $0x10] ss:$8 sps:$4 sm:$0xff]   ;;  %v809_v9 = vld [vmem:[#allocation11 + $0x24] ss:$8 sps:$4 sm:$0xff]   ;;  %v811_v10 = vld [vmem:[#allocation10 + $0x20] ss:$8 sps:$4 sm:$0xff]  }
  0x4e   :  { %535 = vmatprep.subr.bf16.mxu1 %v803_v5  ;;  %v812_v11 = vld [vmem:[#allocation11 + $0x20] ss:$8 sps:$4 sm:$0xff]   ;;  %v813_v12 = vld [vmem:[#allocation10 + $0x34] ss:$8 sps:$4 sm:$0xff]   ;;  %v817_v14 = vld [vmem:[#allocation10 + $0x30] ss:$8 sps:$4 sm:$0xff]  }
  0x4f   :  { %v815_v13 = vld [vmem:[#allocation11 + $0x34] ss:$8 sps:$4 sm:$0xff]   ;;  %v818_v15 = vld [vmem:[#allocation11 + $0x30] ss:$8 sps:$4 sm:$0xff]   ;;  %v819_v16 = vld [vmem:[#allocation10 + $0x44] ss:$8 sps:$4 sm:$0xff]  }
  0x50   :  { %303 = vmatpush1.bf16.msra.mxu0 %v805_v6  ;;  %v821_v17 = vld [vmem:[#allocation11 + $0x44] ss:$8 sps:$4 sm:$0xff]   ;;  %v823_v18 = vld [vmem:[#allocation10 + $0x40] ss:$8 sps:$4 sm:$0xff]   ;;  %v825_v20 = vld [vmem:[#allocation10 + $0x54] ss:$8 sps:$4 sm:$0xff]  }
  0x51   :  { %536 = vmatpush1.bf16.msra.mxu1 %v806_v7  ;;  %304 = vmatprep.subr.bf16.mxu0 %v807_v8  ;;  %v824_v19 = vld [vmem:[#allocation11 + $0x40] ss:$8 sps:$4 sm:$0xff]   ;;  %v827_v21 = vld [vmem:[#allocation11 + $0x54] ss:$8 sps:$4 sm:$0xff]   ;;  %v829_v22 = vld [vmem:[#allocation10 + $0x50] ss:$8 sps:$4 sm:$0xff]  }
  0x52   :  { %537 = vmatprep.subr.bf16.mxu1 %v809_v9  ;;  %v830_v23 = vld [vmem:[#allocation11 + $0x50] ss:$8 sps:$4 sm:$0xff]   ;;  %v831_v24 = vld [vmem:[#allocation10 + $0x64] ss:$8 sps:$4 sm:$0xff]   ;;  %v835_v26 = vld [vmem:[#allocation10 + $0x60] ss:$8 sps:$4 sm:$0xff]  }
  0x53   :  { %v833_v25 = vld [vmem:[#allocation11 + $0x64] ss:$8 sps:$4 sm:$0xff]   ;;  %v836_v27 = vld [vmem:[#allocation11 + $0x60] ss:$8 sps:$4 sm:$0xff]   ;;  %v837_v28 = vld [vmem:[#allocation10 + $0x74] ss:$8 sps:$4 sm:$0xff]  }
  0x54   :  { %305 = vmatpush1.bf16.msra.mxu0 %v811_v10  ;;  %v839_v29 = vld [vmem:[#allocation11 + $0x74] ss:$8 sps:$4 sm:$0xff]   ;;  %v841_v30 = vld [vmem:[#allocation10 + $0x70] ss:$8 sps:$4 sm:$0xff]   ;;  %v843_v32 = vld [vmem:[#allocation10 + $0x84] ss:$8 sps:$4 sm:$0xff]  }
  0x55   :  { %538 = vmatpush1.bf16.msra.mxu1 %v812_v11  ;;  %306 = vmatprep.subr.bf16.mxu0 %v813_v12  ;;  %v842_v31 = vld [vmem:[#allocation11 + $0x70] ss:$8 sps:$4 sm:$0xff]   ;;  %v845_v33 = vld [vmem:[#allocation11 + $0x84] ss:$8 sps:$4 sm:$0xff]   ;;  %v847_v34 = vld [vmem:[#allocation10 + $0x80] ss:$8 sps:$4 sm:$0xff]  }
  0x56   :  { %539 = vmatprep.subr.bf16.mxu1 %v815_v13  ;;  %v848_v35 = vld [vmem:[#allocation11 + $0x80] ss:$8 sps:$4 sm:$0xff]   ;;  %v849_v36 = vld [vmem:[#allocation10 + $0x94] ss:$8 sps:$4 sm:$0xff]   ;;  %v853_v38 = vld [vmem:[#allocation10 + $0x90] ss:$8 sps:$4 sm:$0xff]  }
  0x57   :  { %v851_v37 = vld [vmem:[#allocation11 + $0x94] ss:$8 sps:$4 sm:$0xff]   ;;  %v854_v39 = vld [vmem:[#allocation11 + $0x90] ss:$8 sps:$4 sm:$0xff]   ;;  %v855_v40 = vld [vmem:[#allocation10 + $0xa4] ss:$8 sps:$4 sm:$0xff]  }
  0x58   :  { %307 = vmatpush1.bf16.msra.mxu0 %v817_v14  ;;  %v857_v41 = vld [vmem:[#allocation11 + $0xa4] ss:$8 sps:$4 sm:$0xff]   ;;  %v859_v42 = vld [vmem:[#allocation10 + $0xa0] ss:$8 sps:$4 sm:$0xff]   ;;  %v861_v44 = vld [vmem:[#allocation10 + $0xb4] ss:$8 sps:$4 sm:$0xff]  }
  0x59   :  { %540 = vmatpush1.bf16.msra.mxu1 %v818_v15  ;;  %308 = vmatprep.subr.bf16.mxu0 %v819_v16  ;;  %v860_v43 = vld [vmem:[#allocation11 + $0xa0] ss:$8 sps:$4 sm:$0xff]   ;;  %v863_v45 = vld [vmem:[#allocation11 + $0xb4] ss:$8 sps:$4 sm:$0xff]   ;;  %v865_v48 = vld [vmem:[#allocation10 + $0xb0] ss:$8 sps:$4 sm:$0xff]  }
  0x5a   :  { %541 = vmatprep.subr.bf16.mxu1 %v821_v17  ;;  %v101_v46 = vld [vmem:[#allocation8 + $0x8] sm:$0xff]  ;;  %v103_v47 = vld [vmem:[#allocation5 + $0x8] sm:$0xff]  ;;  %v100_v0 = vld [vmem:[#allocation8] sm:$0xff]  ;;  %s1069_s3 = smov [#allocation13]   ;;  %s1070_s21 = smov [#allocation14]  }
  0x5b   :  { %v866_v49 = vld [vmem:[#allocation11 + $0xb0] ss:$8 sps:$4 sm:$0xff]   ;;  %v105_v50 = vsub.f32 %v101_v46, %v103_v47  ;;  %v867_v51 = vld [vmem:[#allocation10 + $0xc4] ss:$8 sps:$4 sm:$0xff]   ;;  %v871_v54 = vld [vmem:[#allocation10 + $0xc0] ss:$8 sps:$4 sm:$0xff]  }
  0x5c   :  { %309 = vmatpush1.bf16.msra.mxu0 %v823_v18  ;;  %v869_v52 = vld [vmem:[#allocation11 + $0xc4] ss:$8 sps:$4 sm:$0xff]   ;;  %v872_v55 = vld [vmem:[#allocation11 + $0xc0] ss:$8 sps:$4 sm:$0xff]   ;;  %v873_v56 = vld [vmem:[#allocation10 + $0xd4] ss:$8 sps:$4 sm:$0xff]  }
  0x5d   :  { %542 = vmatpush1.bf16.msra.mxu1 %v824_v19  ;;  %310 = vmatprep.subr.bf16.mxu0 %v825_v20  ;;  %v107_v53 = vpack.c.bf16 %v105_v50, %v105_v50  ;;  %v875_v57 = vld [vmem:[#allocation11 + $0xd4] ss:$8 sps:$4 sm:$0xff]   ;;  %v877_v58 = vld [vmem:[#allocation10 + $0xd0] ss:$8 sps:$4 sm:$0xff]   ;;  %v879_v60 = vld [vmem:[#allocation10 + $0xe4] ss:$8 sps:$4 sm:$0xff]  }
  0x5e   :  { %543 = vmatprep.subr.bf16.mxu1 %v827_v21  ;;  %v878_v59 = vld [vmem:[#allocation11 + $0xd0] ss:$8 sps:$4 sm:$0xff]   ;;  %v881_v61 = vld [vmem:[#allocation11 + $0xe4] ss:$8 sps:$4 sm:$0xff]   ;;  %v883_v62 = vld [vmem:[#allocation10 + $0xe0] ss:$8 sps:$4 sm:$0xff]  }
  0x5f   :  { %332 = vmatprep.mubr.bf16.mxu0 %v107_v53  ;;  %565 = vmatprep.mubr.bf16.mxu1 %v107_v53  ;;  %v884_v63 = vld [vmem:[#allocation11 + $0xe0] ss:$8 sps:$4 sm:$0xff]   ;;  %v885_v2 = vld [vmem:[#allocation10 + $0xf4] ss:$8 sps:$4 sm:$0xff]   ;;  %v889_v5 = vld [vmem:[#allocation10 + $0xf0] ss:$8 sps:$4 sm:$0xff]  }
  0x60   :  { %311 = vmatpush1.bf16.msra.mxu0 %v829_v22  ;;  %v102_v1 = vld [vmem:[#allocation5] sm:$0xff]  ;;  %v887_v3 = vld [vmem:[#allocation11 + $0xf4] ss:$8 sps:$4 sm:$0xff]   ;;  %v890_v6 = vld [vmem:[#allocation11 + $0xf0] ss:$8 sps:$4 sm:$0xff]   ;;  %s678_s19 = sshll.u32 %s1069_s3, 4  ;;  %s679_s19 = int_to_ptr.vmem [resolvable:$true] %s678_s19 }
  0x61   :  { %544 = vmatpush1.bf16.msra.mxu1 %v830_v23  ;;  %312 = vmatprep.subr.bf16.mxu0 %v831_v24  ;;  %v104_v4 = vsub.f32 %v100_v0, %v102_v1  ;;  %s688_s22 = sshll.u32 %s1070_s21, 4  ;;  %s1071_s23 = smov [#allocation16]   ;;  %s689_s22 = int_to_ptr.vmem [resolvable:$true] %s688_s22 }
  0x62   :  { %545 = vmatprep.subr.bf16.mxu1 %v833_v25  ;;  %s698_s25 = sshll.u32 %s1071_s23, 4  ;;  %s987_s26 = scalar_lea.vmem %s679_s19, 128  ;;  %s1167_s25 = int_to_ptr.vmem [resolvable:$true] %s698_s25 }
  0x63   :  { %v106_v7 = vpack.c.bf16 %v104_v4, %v104_v4  ;;  %p988_p4 = scmp.ne.s32.totalorder %s679_s19, %s987_s26  ;;  %p992_p5 = scmp.lt.s32.totalorder %s679_s19, %s679_s19 }
  0x64   :  { %313 = vmatpush1.bf16.msra.mxu0 %v835_v26  ;;  %p993_p6 = scmp.lt.s32.totalorder %s987_s26, %s987_s26 }
  0x65   :  { %546 = vmatpush1.bf16.msra.mxu1 %v836_v27  ;;  %314 = vmatprep.subr.bf16.mxu0 %v837_v28 }
  0x66   :  { %547 = vmatprep.subr.bf16.mxu1 %v839_v29  ;;  %p994_p7 = por %p993_p6, %p992_p5 }
  0x68   :  { %315 = vmatpush1.bf16.msra.mxu0 %v841_v30  ;;  %p995_p8 = pnand %p994_p7, %p988_p4 }
  0x69   :  { %548 = vmatpush1.bf16.msra.mxu1 %v842_v31  ;;  %316 = vmatprep.subr.bf16.mxu0 %v843_v32 }
  0x6a   :  { %549 = vmatprep.subr.bf16.mxu1 %v845_v33 }
  0x6c   :  { %317 = vmatpush1.bf16.msra.mxu0 %v847_v34 }
  0x6d   :  { %550 = vmatpush1.bf16.msra.mxu1 %v848_v35  ;;  %318 = vmatprep.subr.bf16.mxu0 %v849_v36 }
  0x6e   :  { %551 = vmatprep.subr.bf16.mxu1 %v851_v37 }
  0x70   :  { %319 = vmatpush1.bf16.msra.mxu0 %v853_v38 }
  0x71   :  { %552 = vmatpush1.bf16.msra.mxu1 %v854_v39  ;;  %320 = vmatprep.subr.bf16.mxu0 %v855_v40 }
  0x72   :  { %553 = vmatprep.subr.bf16.mxu1 %v857_v41 }
  0x74   :  { %321 = vmatpush1.bf16.msra.mxu0 %v859_v42 }
  0x75   :  { %554 = vmatpush1.bf16.msra.mxu1 %v860_v43  ;;  %322 = vmatprep.subr.bf16.mxu0 %v861_v44 }
  0x76   :  { %555 = vmatprep.subr.bf16.mxu1 %v863_v45 }
  0x78   :  { %323 = vmatpush1.bf16.msra.mxu0 %v865_v48 }
  0x79   :  { %556 = vmatpush1.bf16.msra.mxu1 %v866_v49  ;;  %324 = vmatprep.subr.bf16.mxu0 %v867_v51 }
  0x7a   :  { %557 = vmatprep.subr.bf16.mxu1 %v869_v52 }
  0x7c   :  { %325 = vmatpush1.bf16.msra.mxu0 %v871_v54 }
  0x7d   :  { %558 = vmatpush1.bf16.msra.mxu1 %v872_v55  ;;  %326 = vmatprep.subr.bf16.mxu0 %v873_v56 }
  0x7e   :  { %559 = vmatprep.subr.bf16.mxu1 %v875_v57 }
  0x80   :  { %327 = vmatpush1.bf16.msra.mxu0 %v877_v58 }
  0x81   :  { %560 = vmatpush1.bf16.msra.mxu1 %v878_v59  ;;  %328 = vmatprep.subr.bf16.mxu0 %v879_v60 }
  0x82   :  { %561 = vmatprep.subr.bf16.mxu1 %v881_v61 }
  0x84   :  { %329 = vmatpush1.bf16.msra.mxu0 %v883_v62 }
  0x85   :  { %562 = vmatpush1.bf16.msra.mxu1 %v884_v63  ;;  %330 = vmatprep.subr.bf16.mxu0 %v885_v2 }
  0x86   :  { %563 = vmatprep.subr.bf16.mxu1 %v887_v3 }
  0x88   :  { %331 = vmatpush1.bf16.msra.mxu0 %v889_v5 }
  0x89   :  { %564 = vmatpush1.bf16.msra.mxu1 %v890_v6 }
  0x8b   :  { %333 = vmatmul.mubr.bf16.vlgmr.msra.gmra.mrb[0].mxu0 %v106_v7 }
  0x8c   :  { %566 = vmatmul.mubr.bf16.vlgmr.msra.gmra.mrb[0].mxu1 %v106_v7 }
 0x15e   :  { %v334_v8 = vpop.f32.mrb[0].mxu0 }
 0x15f   :  { %v567_v9 = vpop.f32.mrb[0].mxu1  ;;  %v574_v10 = vmul.f32 %v334_v8, %v334_v8  ;;  %v336_v12 = vpop.f32.mrb[1].mxu0 }
 0x160   :  { %v576_v11 = vmul.f32 %v567_v9, %v567_v9  ;;  %v569_v13 = vpop.f32.mrb[1].mxu1  ;;  %v575_v14 = vmul.f32 %v336_v12, %v336_v12  ;;  %v338_v16 = vpop.f32.mrb[2].mxu0 }
 0x161   :  { %v577_v15 = vmul.f32 %v569_v13, %v569_v13  ;;  %v571_v17 = vpop.f32.mrb[2].mxu1  ;;  %v339_v19 = vpop.f32.mrb[3].mxu0 }
 0x162   :  { %v578_v18 = vadd.f32 %v576_v11, %v574_v10  ;;  %v572_v20 = vpop.f32.mrb[3].mxu1 }
 0x163   :  { %v579_v21 = vadd.f32 %v577_v15, %v575_v14 }
 0x164   :  { %891 = vrsqrt.f32 %v578_v18  ;;  %vm582_vm0 = vcmp.eq.f32.partialorder %v578_v18, inf  ;;  %v585_v25 = vand.u32 2147483648, %v578_v18  ;;  %vm584_vm1 = vcmp.eq.f32.partialorder %v578_v18, 0.0 }
 0x165   :  { %893 = vrsqrt.f32 %v579_v21  ;;  %vm589_vm2 = vcmp.eq.f32.partialorder %v579_v21, inf  ;;  %v592_v28 = vand.u32 2147483648, %v579_v21  ;;  %vm591_vm3 = vcmp.eq.f32.partialorder %v579_v21, 0.0 }
 0x16e   :  { %v892_v22 = vpop.eup %891 }
 0x16f   :  { %v894_v23 = vpop.eup %893  ;;  %v581_v24 = vmul.f32 %v892_v22, %v578_v18 }
 0x170   :  { %v588_v26 = vmul.f32 %v894_v23, %v579_v21 }
 0x171   :  { %v583_v27 = vsel %vm582_vm0, %v578_v18, %v581_v24 }
 0x172   :  { %v586_v29 = vsel %vm584_vm1, %v585_v25, %v583_v27  ;;  %v590_v30 = vsel %vm589_vm2, %v579_v21, %v588_v26 }
 0x173   :  { %v593_v31 = vsel %vm591_vm3, %v592_v28, %v590_v30  ;;  %v594_v32 = vadd.f32 1.0, %v586_v29 }
 0x174   :  { %v595_v33 = vadd.f32 1.0, %v593_v31 }
 0x175   :  { %895 = vlog2.f32 %v594_v32 }
 0x176   :  { %897 = vlog2.f32 %v595_v33 }
 0x17f   :  { %v896_v34 = vpop.eup %895 }
 0x180   :  { %v898_v35 = vpop.eup %897  ;;  %v597_v36 = vmul.f32 0.6931472, %v896_v34 }
 0x181   :  { %v599_v37 = vmul.f32 0.6931472, %v898_v35 }
 0x183   :  { %v660_v38 = vmax.f32 %v597_v36, %v599_v37  ;;  %v632_v39 = vadd.f32 %v599_v37, %v597_v36  ;;  %v646_v40 = vmin.f32 %v597_v36, %v599_v37 }
 0x185   :  { %661 = vmax.xlane.f32.xlu1 %v660_v38  ;;  %633 = vadd.xlane.f32.xlu0 %v632_v39 }
 0x189   :  { %647 = vmin.xlane.f32.xlu0 %v646_v40 }
 0x212   :  { %v662_v41 = vpop.xlane.xlu1 %661  ;;  %v634_v42 = vpop.xlane.xlu0 %633 }
 0x213   :  { %v663_v43 = vrot.slane %v662_v41, 4  ;;  %v635_v44 = vrot.slane %v634_v42, 4 }
 0x215   :  { %v664_v45 = vmax.f32 %v662_v41, %v663_v43  ;;  %v636_v46 = vadd.f32 %v635_v44, %v634_v42 }
 0x216   :  { %v648_v47 = vpop.xlane.xlu0 %647 }
 0x217   :  { %v665_v48 = vrot.slane %v664_v45, 2  ;;  %v637_v49 = vrot.slane %v636_v46, 2  ;;  %v649_v50 = vrot.slane %v648_v47, 4 }
 0x219   :  { %v650_v51 = vmin.f32 %v648_v47, %v649_v50  ;;  %v638_v52 = vadd.f32 %v637_v49, %v636_v46  ;;  %v666_v53 = vmax.f32 %v664_v45, %v665_v48 }
 0x21b   :  { %v651_v54 = vrot.slane %v650_v51, 2  ;;  %v639_v55 = vrot.slane %v638_v52, 1  ;;  %v667_v58 = vrot.slane %v666_v53, 1 }
 0x21d   :  { %v652_v56 = vmin.f32 %v650_v51, %v651_v54  ;;  %v640_v57 = vadd.f32 %v639_v55, %v638_v52  ;;  %v668_v61 = vmax.f32 %v666_v53, %v667_v58 }
 0x21f   :  { %780 = vpush %v640_v57  ;;  %v653_v59 = vrot.slane %v652_v56, 1 }
 0x221   :  { %v654_v60 = vmin.f32 %v652_v56, %v653_v59 }
 0x223   :  { %782 = vpush %v654_v60 }
 0x224   :  { %784 = vpush %v668_v61 }
 0x250   :  { %s781_s20 = spop %780 }
 0x251   :  { %v642_v62 = vstv %s781_s20 }
 0x252   :  { %643 = vst [vmem:[#allocation13] sm:$0xff] %v642_v62 }
 0x253   :  { %998 = shalt.err (!%p995_p8)
}
 0x254   :  { %s999_s29 = scalar_lea.hbm %s1202_s4, 128 }
 0x255   :  { %p1000_p9 = scmp.ne.s32.totalorder %s1202_s4, %s999_s29  ;;  %p1003_p10 = scmp.lt.u32.totalorder %s999_s29, %s1202_s4 }
 0x257   :  { %p1005_p11 = pnand %p1003_p10, %p1000_p9 }
 0x259   :  { %1008 = shalt.err (!%p1005_p11)
}
 0x25a   :  { %681 = dma.vmem_to_hbm [thread:$0]  %s679_s19, 128, %s1202_s4, [#allocation7]  }
 0x25b   :  { %s783_s10 = spop %782  ;;  %s1009_s12 = scalar_lea.vmem %s689_s22, 128 }
 0x25c   :  { %v656_v63 = vstv %s783_s10  ;;  %s785_s11 = spop %784  ;;  %p1010_p12 = scmp.ne.s32.totalorder %s689_s22, %s1009_s12 }
 0x25d   :  { %657 = vst [vmem:[#allocation14] sm:$0xff] %v656_v63  ;;  %v670_v0 = vstv %s785_s11  ;;  %p1014_p13 = scmp.lt.s32.totalorder %s689_s22, %s689_s22  ;;  %p1015_p0 = scmp.lt.s32.totalorder %s1009_s12, %s1009_s12 }
 0x25e   :  { %671 = vst [vmem:[#allocation16] sm:$0xff] %v670_v0 }
 0x25f   :  { %p1016_p1 = por %p1015_p0, %p1014_p13 }
 0x261   :  { %p1017_p2 = pnand %p1016_p1, %p1010_p12 }
 0x263   :  { %1020 = shalt.err (!%p1017_p2)
}
 0x264   :  { %s1021_s4 = scalar_lea.hbm %s1203_s5, 128 }
 0x265   :  { %p1022_p3 = scmp.ne.s32.totalorder %s1203_s5, %s1021_s4  ;;  %p1025_p4 = scmp.lt.u32.totalorder %s1021_s4, %s1203_s5 }
 0x267   :  { %p1027_p5 = pnand %p1025_p4, %p1022_p3 }
 0x269   :  { %1030 = shalt.err (!%p1027_p5)
}
 0x26a   :  { %691 = dma.vmem_to_hbm [thread:$0]  %s689_s22, 128, %s1203_s5, [#allocation15]  }
 0x26b   :  { %s1031_s3 = scalar_lea.vmem %s1167_s25, 128  ;;  %p1036_p7 = scmp.lt.s32.totalorder %s1167_s25, %s1167_s25 }
 0x26c   :  { %p1032_p6 = scmp.ne.s32.totalorder %s1167_s25, %s1031_s3  ;;  %p1037_p8 = scmp.lt.s32.totalorder %s1031_s3, %s1031_s3 }
 0x26e   :  { %p1038_p9 = por %p1037_p8, %p1036_p7 }
 0x270   :  { %p1039_p10 = pnand %p1038_p9, %p1032_p6 }
 0x272   :  { %1042 = shalt.err (!%p1039_p10)
}
 0x273   :  { %s1043_s21 = scalar_lea.hbm %s1204_s6, 128 }
 0x274   :  { %p1044_p11 = scmp.ne.s32.totalorder %s1204_s6, %s1043_s21  ;;  %p1047_p12 = scmp.lt.u32.totalorder %s1043_s21, %s1204_s6 }
 0x276   :  { %p1049_p13 = pnand %p1047_p12, %p1044_p11 }
 0x278   :  { %1052 = shalt.err (!%p1049_p13)
}
 0x279   :  { %701 = dma.vmem_to_hbm [thread:$0]  %s1167_s25, 128, %s1204_s6, [#allocation15]  }
 0x27a   :  { %1059 = dma.done.wait [#allocation7], 128  }
 0x27b   :  { %1060 = vsyncadd [#allocation7], 4294967168 }
 0x27c   :  { %1061 = dma.done.wait [#allocation15], 256  }
 0x27d   :  { %1062 = vsyncadd [#allocation15], 4294967040 }
 0x27e   :  { %711 = vsyncpa [#allocation6], 1 }
 0x27f   :  { %712 = vsyncpa [#allocation9], 1 }
 0x280   :  { %713 = vsyncpa [#allocation12], 1 }
 0x281   :  { %714 = vsyncpa [#allocation7], 1 }
 0x282   :  { %715 = vsyncpa [#allocation15], 1 }

</bundles_post_ra>
